<compile_context>
chip_gen: v7x
topology: tpu7x:2x2x1
jax: 0.10.0
libtpu: 0.0.40
codegen_flags: <defaults>
</compile_context>

<pallas_src>
import functools

import jax
import jax.numpy as jnp
import numpy as np
from jax.experimental import pallas as pl
from jax.experimental.pallas import tpu as pltpu


def _make_tap_masks(h, w):
    """0/1 masks (9, H*W) zeroing out-of-image pixels for each 3x3 tap."""
    masks = np.zeros((9, h * w), np.float32)
    for ky in range(3):
        for kx in range(3):
            dy, dx = ky - 1, kx - 1
            m = np.zeros((h, w), np.float32)
            m[max(0, -dy):min(h, h - dy), max(0, -dx):min(w, w - dx)] = 1.0
            masks[3 * ky + kx] = m.reshape(-1)
    return masks


def _residual_block_kernel(x_ref, mask_ref, w1_ref, s1_ref, b1_ref, alpha_ref,
                           w2_ref, s2_ref, b2_ref, out_ref, patch_ref, *, W):
    # x_ref    : (1, Cp, N) f32, N = Bt*H*W  (Bt images concatenated on lanes,
    #                                         channels on sublanes; lane-dense)
    # mask_ref : (9, N)     bf16 0/1 boundary masks, one row per 3x3 tap,
    #                        tiled Bt times (also kills cross-image roll leak)
    # w*_ref   : (Cp, 9*Cp) bf16 fused conv weights, w[co, tap*Cp + ci]
    # s*/b*    : (Cp, 1)    f32 folded BatchNorm scale / bias (zero in padding)
    # alpha    : (1,)       f32 PReLU slope (SMEM)
    # out_ref  : (1, Cp, N) f32
    # patch_ref: VMEM scratch (9*Cp, N) bf16 - stacked shifted taps ("im2col^T")
    Cp = x_ref.shape[1]
    N = x_ref.shape[2]
    x = x_ref[0]                                           # (Cp, N) f32

    def conv3x3(act, w_ref):
        # Stage the 9 shifted+masked bf16 copies of `act` into patch_ref, then
        # one fused MXU matmul: (Cp, 9Cp) x (9Cp, N) -> (Cp, N), f32 accumulate.
        for ky in range(3):
            for kx in range(3):
                dy, dx = ky - 1, kx - 1
                s = dy * W + dx                  # flat-pixel shift of this tap
                t = 3 * ky + kx
                if s == 0:
                    piece = act.astype(jnp.bfloat16)   # center: no shift/mask
                else:
                    # piece[p] = act[p + s]; any wrap-around (image edge or the
                    # next image in the lane-concatenated batch) is zeroed by
                    # the boundary mask.  Mask re-sliced here, not hoisted.
                    piece = (pltpu.roll(act, shift=(-s) % N, axis=1)
                             .astype(jnp.bfloat16) * mask_ref[t:t + 1, :])
                patch_ref[t * Cp:(t + 1) * Cp, :] = piece
        return jnp.dot(w_ref[...], patch_ref[...],
                       preferred_element_type=jnp.float32)  # (Cp, N) f32

    alpha = alpha_ref[0]

    # conv1 -> folded BN1 -> PReLU                      (VPU math kept in f32)
    h = conv3x3(x, w1_ref)
    h = h * s1_ref[...] + b1_ref[...]
    h = jnp.where(h > 0, h, h * alpha)

    # conv2 -> folded BN2
    h = conv3x3(h, w2_ref)
    h = h * s2_ref[...] + b2_ref[...]

    # residual add: out = x + block(x)
    out_ref[...] = (x + h).reshape(1, Cp, N).astype(out_ref.dtype)


def residual_block(x_nchw, params, *, max_lanes_per_step=16 * 1024):
    """out = x + (Conv3x3 -> BN -> PReLU -> Conv3x3 -> BN)(x).  NCHW in/out.

    BatchNorm uses pre-folded (running) statistics (inference-mode forward).
    """
    w1, s1, b1, alpha, w2, s2, b2 = params
    B, C, H, W = x_nchw.shape
    P = H * W
    assert P % 128 == 0, "H*W must be a multiple of 128 for lane-dense blocks"

    # Channel padding to a sublane multiple (8): full vregs and tile-aligned
    # patch-staging stores.  Padded channels stay exactly zero end-to-end.
    Cp = ((C + 7) // 8) * 8

    # Fold Bt images into the lane (matmul-N) axis of each grid step to
    # amortize per-step overhead; Bt divides B and respects a lane budget.
    bt = max(1, min(B, max_lanes_per_step // P))
    while B % bt:
        bt -= 1
    G = B // bt
    N = bt * P

    # Parameter prep (tiny host-side glue):
    #   fuse conv weights HWIO (3,3,Ci,Co) -> (Cp, 9*Cp) bf16 (zero-padded);
    #   BN scale/bias stay f32 column vectors (zero-padded) for the VPU.
    def fuse(w):
        w = jnp.transpose(w, (3, 0, 1, 2))               # (Co, 3, 3, Ci)
        w = jnp.pad(w, ((0, Cp - C), (0, 0), (0, 0), (0, Cp - C)))
        return w.reshape(Cp, 9 * Cp).astype(jnp.bfloat16)

    def pad_vec(v):
        return jnp.pad(v, (0, Cp - C)).reshape(Cp, 1)

    w1f, w2f = fuse(w1), fuse(w2)
    s1c, b1c = pad_vec(s1), pad_vec(b1)
    s2c, b2c = pad_vec(s2), pad_vec(b2)

    # Per-image boundary masks in bf16 (values exactly 0/1), tiled over the Bt
    # images that share each grid step's lane axis.
    masks = jnp.tile(jnp.asarray(_make_tap_masks(H, W), dtype=jnp.bfloat16),
                     (1, bt))                             # (9, N)

    # Lane-dense activation layout: (G, Cp, Bt*P); image b of a group occupies
    # lanes [b*P, (b+1)*P).  Pure wrapper-side layout plumbing.
    x_p = jnp.pad(x_nchw.reshape(B, C, P), ((0, 0), (0, Cp - C), (0, 0)))
    x_blk = (x_p.reshape(G, bt, Cp, P)
             .transpose(0, 2, 1, 3)
             .reshape(G, Cp, N))

    kernel = functools.partial(_residual_block_kernel, W=W)

    out = pl.pallas_call(
        kernel,
        out_shape=jax.ShapeDtypeStruct((G, Cp, N), x_nchw.dtype),
        grid_spec=pltpu.PrefetchScalarGridSpec(
            num_scalar_prefetch=0,
            grid=(G,),
            in_specs=[
                pl.BlockSpec((1, Cp, N), lambda g: (g, 0, 0)),       # x
                pl.BlockSpec((9, N), lambda g: (0, 0)),              # tap masks
                pl.BlockSpec((Cp, 9 * Cp), lambda g: (0, 0)),        # w1 fused
                pl.BlockSpec((Cp, 1), lambda g: (0, 0)),             # s1
                pl.BlockSpec((Cp, 1), lambda g: (0, 0)),             # b1
                pl.BlockSpec(memory_space=pltpu.MemorySpace.SMEM),   # alpha
                pl.BlockSpec((Cp, 9 * Cp), lambda g: (0, 0)),        # w2 fused
                pl.BlockSpec((Cp, 1), lambda g: (0, 0)),             # s2
                pl.BlockSpec((Cp, 1), lambda g: (0, 0)),             # b2
            ],
            out_specs=pl.BlockSpec((1, Cp, N), lambda g: (g, 0, 0)),
            scratch_shapes=[pltpu.VMEM((9 * Cp, N), jnp.bfloat16)],
        ),
        compiler_params=pltpu.CompilerParams(
            dimension_semantics=("parallel",),   # v7x: shard groups over 2 TCs
            vmem_limit_bytes=32 * 1024 * 1024,
        ),
    )(x_blk, masks, w1f, s1c, b1c, alpha, w2f, s2c, b2c)

    # Undo the layout: (G, Cp, N) -> (B, C, H, W), dropping padded channels.
    out = (out.reshape(G, Cp, bt, P)
           .transpose(0, 2, 1, 3)
           .reshape(B, Cp, P)[:, :C, :]
           .reshape(B, C, H, W))
    return out


def init_params(key, c):
    """Deterministic SRGAN residual-body parameters (PyTorch-equivalent)."""
    ks = jax.random.split(key, 10)
    eps = 1e-5
    w1 = 0.1 * jax.random.normal(ks[0], (3, 3, c, c), jnp.float32)   # HWIO
    w2 = 0.1 * jax.random.normal(ks[1], (3, 3, c, c), jnp.float32)   # HWIO
    g1 = 1.0 + 0.1 * jax.random.normal(ks[2], (c,), jnp.float32)
    be1 = 0.1 * jax.random.normal(ks[3], (c,), jnp.float32)
    m1 = 0.1 * jax.random.normal(ks[4], (c,), jnp.float32)
    v1 = jnp.abs(1.0 + 0.1 * jax.random.normal(ks[5], (c,), jnp.float32))
    g2 = 1.0 + 0.1 * jax.random.normal(ks[6], (c,), jnp.float32)
    be2 = 0.1 * jax.random.normal(ks[7], (c,), jnp.float32)
    m2 = 0.1 * jax.random.normal(ks[8], (c,), jnp.float32)
    v2 = jnp.abs(1.0 + 0.1 * jax.random.normal(ks[9], (c,), jnp.float32))
    s1 = g1 / jnp.sqrt(v1 + eps)
    b1 = be1 - m1 * s1
    s2 = g2 / jnp.sqrt(v2 + eps)
    b2 = be2 - m2 * s2
    alpha = jnp.full((1,), 0.25, jnp.float32)    # PyTorch PReLU default slope
    return w1, s1, b1, alpha, w2, s2, b2


def ref_forward(x_nchw, w1, s1, b1, alpha, w2, s2, b2):
    """Pure-JAX f32 reference (XLA convs), NCHW in / NCHW out."""
    x = jnp.transpose(x_nchw, (0, 2, 3, 1))      # NHWC

    def conv(h, w):
        return jax.lax.conv_general_dilated(
            h, w, window_strides=(1, 1), padding="SAME",
            dimension_numbers=("NHWC", "HWIO", "NHWC"))

    h = conv(x, w1) * s1 + b1
    h = jnp.where(h > 0, h, h * alpha[0])
    h = conv(h, w2) * s2 + b2
    return jnp.transpose(x + h, (0, 3, 1, 2))


if __name__ == "__main__":
    key = jax.random.PRNGKey(0)
    kx, kp = jax.random.split(key)
    B, C, H, W = 2, 4, 16, 16
    x = jax.random.normal(kx, (B, C, H, W), jnp.float32)
    params = init_params(kp, C)

    out = residual_block(x, params)
    out = jax.block_until_ready(out)

    ref = ref_forward(x, *params)
    assert out.shape == x.shape
    # bf16 MXU operands vs a pure-f32 reference -> modest tolerance.
    np.testing.assert_allclose(np.asarray(out), np.asarray(ref),
                               rtol=3e-2, atol=3e-2)
    print("KERNEL_OK")
</pallas_src>

<mosaic_0001>
module attributes {stable_mosaic.version = 11 : i64} {
  func.func @_residual_block_kernel(%arg0: i32, %arg1: memref<1x8x512xf32, #tpu.memory_space<vmem>>, %arg2: memref<9x512xbf16, #tpu.memory_space<vmem>>, %arg3: memref<8x72xbf16, #tpu.memory_space<vmem>>, %arg4: memref<8x1xf32, #tpu.memory_space<vmem>>, %arg5: memref<8x1xf32, #tpu.memory_space<vmem>>, %arg6: memref<1xf32, #tpu.memory_space<smem>>, %arg7: memref<8x72xbf16, #tpu.memory_space<vmem>>, %arg8: memref<8x1xf32, #tpu.memory_space<vmem>>, %arg9: memref<8x1xf32, #tpu.memory_space<vmem>>, %arg10: memref<1x8x512xf32, #tpu.memory_space<vmem>>, %arg11: memref<72x512xbf16, #tpu.memory_space<vmem>>) attributes {dimension_semantics = [#tpu.dimension_semantics<parallel>], iteration_bounds = array<i64: 1>, scalar_prefetch = 0 : i64, scratch_operands = 1 : i64, tpu.core_type = #tpu.core_type<tc>, window_params = [{transform_indices = @transform_0, window_bounds = array<i64: 1, 8, 512>}, {pipeline_mode = #tpu.pipeline_mode<synchronous>, transform_indices = @transform_1, window_bounds = array<i64: 9, 512>}, {pipeline_mode = #tpu.pipeline_mode<synchronous>, transform_indices = @transform_2, window_bounds = array<i64: 8, 72>}, {pipeline_mode = #tpu.pipeline_mode<synchronous>, transform_indices = @transform_3, window_bounds = array<i64: 8, 1>}, {pipeline_mode = #tpu.pipeline_mode<synchronous>, transform_indices = @transform_4, window_bounds = array<i64: 8, 1>}, {transform_indices = @transform_5, window_bounds = array<i64: 1>}, {pipeline_mode = #tpu.pipeline_mode<synchronous>, transform_indices = @transform_6, window_bounds = array<i64: 8, 72>}, {pipeline_mode = #tpu.pipeline_mode<synchronous>, transform_indices = @transform_7, window_bounds = array<i64: 8, 1>}, {pipeline_mode = #tpu.pipeline_mode<synchronous>, transform_indices = @transform_8, window_bounds = array<i64: 8, 1>}, {transform_indices = @transform_9, window_bounds = array<i64: 1, 8, 512>}]} {
    %c0 = arith.constant 0 : index
    %c0_0 = arith.constant 0 : index
    %c0_1 = arith.constant 0 : index
    %0 = vector.load %arg1[%c0, %c0_0, %c0_1] : memref<1x8x512xf32, #tpu.memory_space<vmem>>, vector<1x8x512xf32>
    %1 = vector.shape_cast %0 : vector<1x8x512xf32> to vector<8x512xf32>
    %c0_2 = arith.constant 0 : index
    %2 = memref.load %arg6[%c0_2] : memref<1xf32, #tpu.memory_space<smem>>
    %c17_i32 = arith.constant 17 : i32
    %3 = tpu.dynamic_rotate %1 by %c17_i32 dim 1 : vector<8x512xf32>, i32 -> vector<8x512xf32>
    %4 = arith.truncf %3 : vector<8x512xf32> to vector<8x512xbf16>
    %c0_3 = arith.constant 0 : index
    %c0_4 = arith.constant 0 : index
    %5 = vector.load %arg2[%c0_3, %c0_4] : memref<9x512xbf16, #tpu.memory_space<vmem>>, vector<1x512xbf16>
    %6 = vector.broadcast %5 : vector<1x512xbf16> to vector<8x512xbf16>
    %7 = arith.mulf %4, %6 : vector<8x512xbf16>
    %c0_5 = arith.constant 0 : index
    %c0_6 = arith.constant 0 : index
    %8 = vector.load %arg11[%c0_5, %c0_6] : memref<72x512xbf16, #tpu.memory_space<vmem>>, vector<8x512xbf16>
    tpu.vector_store %arg11[%c0_5, %c0_6], %7 {strides = array<i32>} : memref<72x512xbf16, #tpu.memory_space<vmem>>, vector<8x512xbf16>,
    %c16_i32 = arith.constant 16 : i32
    %9 = tpu.dynamic_rotate %1 by %c16_i32 dim 1 : vector<8x512xf32>, i32 -> vector<8x512xf32>
    %10 = arith.truncf %9 : vector<8x512xf32> to vector<8x512xbf16>
    %c1 = arith.constant 1 : index
    %c0_7 = arith.constant 0 : index
    %11 = vector.load %arg2[%c1, %c0_7] : memref<9x512xbf16, #tpu.memory_space<vmem>>, vector<1x512xbf16>
    %12 = vector.broadcast %11 : vector<1x512xbf16> to vector<8x512xbf16>
    %13 = arith.mulf %10, %12 : vector<8x512xbf16>
    %c8 = arith.constant 8 : index
    %c0_8 = arith.constant 0 : index
    %14 = vector.load %arg11[%c8, %c0_8] : memref<72x512xbf16, #tpu.memory_space<vmem>>, vector<8x512xbf16>
    tpu.vector_store %arg11[%c8, %c0_8], %13 {strides = array<i32>} : memref<72x512xbf16, #tpu.memory_space<vmem>>, vector<8x512xbf16>,
    %c15_i32 = arith.constant 15 : i32
    %15 = tpu.dynamic_rotate %1 by %c15_i32 dim 1 : vector<8x512xf32>, i32 -> vector<8x512xf32>
    %16 = arith.truncf %15 : vector<8x512xf32> to vector<8x512xbf16>
    %c2 = arith.constant 2 : index
    %c0_9 = arith.constant 0 : index
    %17 = vector.load %arg2[%c2, %c0_9] : memref<9x512xbf16, #tpu.memory_space<vmem>>, vector<1x512xbf16>
    %18 = vector.broadcast %17 : vector<1x512xbf16> to vector<8x512xbf16>
    %19 = arith.mulf %16, %18 : vector<8x512xbf16>
    %c16 = arith.constant 16 : index
    %c0_10 = arith.constant 0 : index
    %20 = vector.load %arg11[%c16, %c0_10] : memref<72x512xbf16, #tpu.memory_space<vmem>>, vector<8x512xbf16>
    tpu.vector_store %arg11[%c16, %c0_10], %19 {strides = array<i32>} : memref<72x512xbf16, #tpu.memory_space<vmem>>, vector<8x512xbf16>,
    %c1_i32 = arith.constant 1 : i32
    %21 = tpu.dynamic_rotate %1 by %c1_i32 dim 1 : vector<8x512xf32>, i32 -> vector<8x512xf32>
    %22 = arith.truncf %21 : vector<8x512xf32> to vector<8x512xbf16>
    %c3 = arith.constant 3 : index
    %c0_11 = arith.constant 0 : index
    %23 = vector.load %arg2[%c3, %c0_11] : memref<9x512xbf16, #tpu.memory_space<vmem>>, vector<1x512xbf16>
    %24 = vector.broadcast %23 : vector<1x512xbf16> to vector<8x512xbf16>
    %25 = arith.mulf %22, %24 : vector<8x512xbf16>
    %c24 = arith.constant 24 : index
    %c0_12 = arith.constant 0 : index
    %26 = vector.load %arg11[%c24, %c0_12] : memref<72x512xbf16, #tpu.memory_space<vmem>>, vector<8x512xbf16>
    tpu.vector_store %arg11[%c24, %c0_12], %25 {strides = array<i32>} : memref<72x512xbf16, #tpu.memory_space<vmem>>, vector<8x512xbf16>,
    %27 = arith.truncf %1 : vector<8x512xf32> to vector<8x512xbf16>
    %c32 = arith.constant 32 : index
    %c0_13 = arith.constant 0 : index
    %28 = vector.load %arg11[%c32, %c0_13] : memref<72x512xbf16, #tpu.memory_space<vmem>>, vector<8x512xbf16>
    tpu.vector_store %arg11[%c32, %c0_13], %27 {strides = array<i32>} : memref<72x512xbf16, #tpu.memory_space<vmem>>, vector<8x512xbf16>,
    %c511_i32 = arith.constant 511 : i32
    %29 = tpu.dynamic_rotate %1 by %c511_i32 dim 1 : vector<8x512xf32>, i32 -> vector<8x512xf32>
    %30 = arith.truncf %29 : vector<8x512xf32> to vector<8x512xbf16>
    %c5 = arith.constant 5 : index
    %c0_14 = arith.constant 0 : index
    %31 = vector.load %arg2[%c5, %c0_14] : memref<9x512xbf16, #tpu.memory_space<vmem>>, vector<1x512xbf16>
    %32 = vector.broadcast %31 : vector<1x512xbf16> to vector<8x512xbf16>
    %33 = arith.mulf %30, %32 : vector<8x512xbf16>
    %c40 = arith.constant 40 : index
    %c0_15 = arith.constant 0 : index
    %34 = vector.load %arg11[%c40, %c0_15] : memref<72x512xbf16, #tpu.memory_space<vmem>>, vector<8x512xbf16>
    tpu.vector_store %arg11[%c40, %c0_15], %33 {strides = array<i32>} : memref<72x512xbf16, #tpu.memory_space<vmem>>, vector<8x512xbf16>,
    %c497_i32 = arith.constant 497 : i32
    %35 = tpu.dynamic_rotate %1 by %c497_i32 dim 1 : vector<8x512xf32>, i32 -> vector<8x512xf32>
    %36 = arith.truncf %35 : vector<8x512xf32> to vector<8x512xbf16>
    %c6 = arith.constant 6 : index
    %c0_16 = arith.constant 0 : index
    %37 = vector.load %arg2[%c6, %c0_16] : memref<9x512xbf16, #tpu.memory_space<vmem>>, vector<1x512xbf16>
    %38 = vector.broadcast %37 : vector<1x512xbf16> to vector<8x512xbf16>
    %39 = arith.mulf %36, %38 : vector<8x512xbf16>
    %c48 = arith.constant 48 : index
    %c0_17 = arith.constant 0 : index
    %40 = vector.load %arg11[%c48, %c0_17] : memref<72x512xbf16, #tpu.memory_space<vmem>>, vector<8x512xbf16>
    tpu.vector_store %arg11[%c48, %c0_17], %39 {strides = array<i32>} : memref<72x512xbf16, #tpu.memory_space<vmem>>, vector<8x512xbf16>,
    %c496_i32 = arith.constant 496 : i32
    %41 = tpu.dynamic_rotate %1 by %c496_i32 dim 1 : vector<8x512xf32>, i32 -> vector<8x512xf32>
    %42 = arith.truncf %41 : vector<8x512xf32> to vector<8x512xbf16>
    %c7 = arith.constant 7 : index
    %c0_18 = arith.constant 0 : index
    %43 = vector.load %arg2[%c7, %c0_18] : memref<9x512xbf16, #tpu.memory_space<vmem>>, vector<1x512xbf16>
    %44 = vector.broadcast %43 : vector<1x512xbf16> to vector<8x512xbf16>
    %45 = arith.mulf %42, %44 : vector<8x512xbf16>
    %c56 = arith.constant 56 : index
    %c0_19 = arith.constant 0 : index
    %46 = vector.load %arg11[%c56, %c0_19] : memref<72x512xbf16, #tpu.memory_space<vmem>>, vector<8x512xbf16>
    tpu.vector_store %arg11[%c56, %c0_19], %45 {strides = array<i32>} : memref<72x512xbf16, #tpu.memory_space<vmem>>, vector<8x512xbf16>,
    %c495_i32 = arith.constant 495 : i32
    %47 = tpu.dynamic_rotate %1 by %c495_i32 dim 1 : vector<8x512xf32>, i32 -> vector<8x512xf32>
    %48 = arith.truncf %47 : vector<8x512xf32> to vector<8x512xbf16>
    %c8_20 = arith.constant 8 : index
    %c0_21 = arith.constant 0 : index
    %49 = vector.load %arg2[%c8_20, %c0_21] : memref<9x512xbf16, #tpu.memory_space<vmem>>, vector<1x512xbf16>
    %50 = vector.broadcast %49 : vector<1x512xbf16> to vector<8x512xbf16>
    %51 = arith.mulf %48, %50 : vector<8x512xbf16>
    %c64 = arith.constant 64 : index
    %c0_22 = arith.constant 0 : index
    %52 = vector.load %arg11[%c64, %c0_22] : memref<72x512xbf16, #tpu.memory_space<vmem>>, vector<8x512xbf16>
    tpu.vector_store %arg11[%c64, %c0_22], %51 {strides = array<i32>} : memref<72x512xbf16, #tpu.memory_space<vmem>>, vector<8x512xbf16>,
    %c0_23 = arith.constant 0 : index
    %c0_24 = arith.constant 0 : index
    %53 = vector.load %arg3[%c0_23, %c0_24] : memref<8x72xbf16, #tpu.memory_space<vmem>>, vector<8x72xbf16>
    %c0_25 = arith.constant 0 : index
    %c0_26 = arith.constant 0 : index
    %54 = vector.load %arg11[%c0_25, %c0_26] : memref<72x512xbf16, #tpu.memory_space<vmem>>, vector<72x512xbf16>
    %cst = arith.constant dense<0.000000e+00> : vector<8x512xf32>
    %55 = tpu.matmul %53, %54, %cst {dimension_numbers = #tpu.dot_dimension_numbers<[1], [0], [0], [1], [0, 0, 1, 1], [], []>} : vector<8x72xbf16>, vector<72x512xbf16>, vector<8x512xf32> -> vector<8x512xf32>
    %c0_27 = arith.constant 0 : index
    %c0_28 = arith.constant 0 : index
    %56 = vector.load %arg4[%c0_27, %c0_28] : memref<8x1xf32, #tpu.memory_space<vmem>>, vector<8x1xf32>
    %57 = vector.broadcast %56 : vector<8x1xf32> to vector<8x512xf32>
    %58 = arith.mulf %55, %57 : vector<8x512xf32>
    %c0_29 = arith.constant 0 : index
    %c0_30 = arith.constant 0 : index
    %59 = vector.load %arg5[%c0_29, %c0_30] : memref<8x1xf32, #tpu.memory_space<vmem>>, vector<8x1xf32>
    %60 = vector.broadcast %59 : vector<8x1xf32> to vector<8x512xf32>
    %61 = arith.addf %58, %60 : vector<8x512xf32>
    %cst_31 = arith.constant 0.000000e+00 : f32
    %62 = vector.broadcast %cst_31 : f32 to vector<8x512xf32>
    %63 = arith.cmpf ogt, %61, %62 : vector<8x512xf32>
    %64 = vector.broadcast %2 : f32 to vector<8x512xf32>
    %65 = arith.mulf %61, %64 : vector<8x512xf32>
    %66 = arith.select %63, %61, %65 : vector<8x512xi1>, vector<8x512xf32>
    %c17_i32_32 = arith.constant 17 : i32
    %67 = tpu.dynamic_rotate %66 by %c17_i32_32 dim 1 : vector<8x512xf32>, i32 -> vector<8x512xf32>
    %68 = arith.truncf %67 : vector<8x512xf32> to vector<8x512xbf16>
    %c0_33 = arith.constant 0 : index
    %c0_34 = arith.constant 0 : index
    %69 = vector.load %arg2[%c0_33, %c0_34] : memref<9x512xbf16, #tpu.memory_space<vmem>>, vector<1x512xbf16>
    %70 = vector.broadcast %69 : vector<1x512xbf16> to vector<8x512xbf16>
    %71 = arith.mulf %68, %70 : vector<8x512xbf16>
    %c0_35 = arith.constant 0 : index
    %c0_36 = arith.constant 0 : index
    %72 = vector.load %arg11[%c0_35, %c0_36] : memref<72x512xbf16, #tpu.memory_space<vmem>>, vector<8x512xbf16>
    tpu.vector_store %arg11[%c0_35, %c0_36], %71 {strides = array<i32>} : memref<72x512xbf16, #tpu.memory_space<vmem>>, vector<8x512xbf16>,
    %c16_i32_37 = arith.constant 16 : i32
    %73 = tpu.dynamic_rotate %66 by %c16_i32_37 dim 1 : vector<8x512xf32>, i32 -> vector<8x512xf32>
    %74 = arith.truncf %73 : vector<8x512xf32> to vector<8x512xbf16>
    %c1_38 = arith.constant 1 : index
    %c0_39 = arith.constant 0 : index
    %75 = vector.load %arg2[%c1_38, %c0_39] : memref<9x512xbf16, #tpu.memory_space<vmem>>, vector<1x512xbf16>
    %76 = vector.broadcast %75 : vector<1x512xbf16> to vector<8x512xbf16>
    %77 = arith.mulf %74, %76 : vector<8x512xbf16>
    %c8_40 = arith.constant 8 : index
    %c0_41 = arith.constant 0 : index
    %78 = vector.load %arg11[%c8_40, %c0_41] : memref<72x512xbf16, #tpu.memory_space<vmem>>, vector<8x512xbf16>
    tpu.vector_store %arg11[%c8_40, %c0_41], %77 {strides = array<i32>} : memref<72x512xbf16, #tpu.memory_space<vmem>>, vector<8x512xbf16>,
    %c15_i32_42 = arith.constant 15 : i32
    %79 = tpu.dynamic_rotate %66 by %c15_i32_42 dim 1 : vector<8x512xf32>, i32 -> vector<8x512xf32>
    %80 = arith.truncf %79 : vector<8x512xf32> to vector<8x512xbf16>
    %c2_43 = arith.constant 2 : index
    %c0_44 = arith.constant 0 : index
    %81 = vector.load %arg2[%c2_43, %c0_44] : memref<9x512xbf16, #tpu.memory_space<vmem>>, vector<1x512xbf16>
    %82 = vector.broadcast %81 : vector<1x512xbf16> to vector<8x512xbf16>
    %83 = arith.mulf %80, %82 : vector<8x512xbf16>
    %c16_45 = arith.constant 16 : index
    %c0_46 = arith.constant 0 : index
    %84 = vector.load %arg11[%c16_45, %c0_46] : memref<72x512xbf16, #tpu.memory_space<vmem>>, vector<8x512xbf16>
    tpu.vector_store %arg11[%c16_45, %c0_46], %83 {strides = array<i32>} : memref<72x512xbf16, #tpu.memory_space<vmem>>, vector<8x512xbf16>,
    %c1_i32_47 = arith.constant 1 : i32
    %85 = tpu.dynamic_rotate %66 by %c1_i32_47 dim 1 : vector<8x512xf32>, i32 -> vector<8x512xf32>
    %86 = arith.truncf %85 : vector<8x512xf32> to vector<8x512xbf16>
    %c3_48 = arith.constant 3 : index
    %c0_49 = arith.constant 0 : index
    %87 = vector.load %arg2[%c3_48, %c0_49] : memref<9x512xbf16, #tpu.memory_space<vmem>>, vector<1x512xbf16>
    %88 = vector.broadcast %87 : vector<1x512xbf16> to vector<8x512xbf16>
    %89 = arith.mulf %86, %88 : vector<8x512xbf16>
    %c24_50 = arith.constant 24 : index
    %c0_51 = arith.constant 0 : index
    %90 = vector.load %arg11[%c24_50, %c0_51] : memref<72x512xbf16, #tpu.memory_space<vmem>>, vector<8x512xbf16>
    tpu.vector_store %arg11[%c24_50, %c0_51], %89 {strides = array<i32>} : memref<72x512xbf16, #tpu.memory_space<vmem>>, vector<8x512xbf16>,
    %91 = arith.truncf %66 : vector<8x512xf32> to vector<8x512xbf16>
    %c32_52 = arith.constant 32 : index
    %c0_53 = arith.constant 0 : index
    %92 = vector.load %arg11[%c32_52, %c0_53] : memref<72x512xbf16, #tpu.memory_space<vmem>>, vector<8x512xbf16>
    tpu.vector_store %arg11[%c32_52, %c0_53], %91 {strides = array<i32>} : memref<72x512xbf16, #tpu.memory_space<vmem>>, vector<8x512xbf16>,
    %c511_i32_54 = arith.constant 511 : i32
    %93 = tpu.dynamic_rotate %66 by %c511_i32_54 dim 1 : vector<8x512xf32>, i32 -> vector<8x512xf32>
    %94 = arith.truncf %93 : vector<8x512xf32> to vector<8x512xbf16>
    %c5_55 = arith.constant 5 : index
    %c0_56 = arith.constant 0 : index
    %95 = vector.load %arg2[%c5_55, %c0_56] : memref<9x512xbf16, #tpu.memory_space<vmem>>, vector<1x512xbf16>
    %96 = vector.broadcast %95 : vector<1x512xbf16> to vector<8x512xbf16>
    %97 = arith.mulf %94, %96 : vector<8x512xbf16>
    %c40_57 = arith.constant 40 : index
    %c0_58 = arith.constant 0 : index
    %98 = vector.load %arg11[%c40_57, %c0_58] : memref<72x512xbf16, #tpu.memory_space<vmem>>, vector<8x512xbf16>
    tpu.vector_store %arg11[%c40_57, %c0_58], %97 {strides = array<i32>} : memref<72x512xbf16, #tpu.memory_space<vmem>>, vector<8x512xbf16>,
    %c497_i32_59 = arith.constant 497 : i32
    %99 = tpu.dynamic_rotate %66 by %c497_i32_59 dim 1 : vector<8x512xf32>, i32 -> vector<8x512xf32>
    %100 = arith.truncf %99 : vector<8x512xf32> to vector<8x512xbf16>
    %c6_60 = arith.constant 6 : index
    %c0_61 = arith.constant 0 : index
    %101 = vector.load %arg2[%c6_60, %c0_61] : memref<9x512xbf16, #tpu.memory_space<vmem>>, vector<1x512xbf16>
    %102 = vector.broadcast %101 : vector<1x512xbf16> to vector<8x512xbf16>
    %103 = arith.mulf %100, %102 : vector<8x512xbf16>
    %c48_62 = arith.constant 48 : index
    %c0_63 = arith.constant 0 : index
    %104 = vector.load %arg11[%c48_62, %c0_63] : memref<72x512xbf16, #tpu.memory_space<vmem>>, vector<8x512xbf16>
    tpu.vector_store %arg11[%c48_62, %c0_63], %103 {strides = array<i32>} : memref<72x512xbf16, #tpu.memory_space<vmem>>, vector<8x512xbf16>,
    %c496_i32_64 = arith.constant 496 : i32
    %105 = tpu.dynamic_rotate %66 by %c496_i32_64 dim 1 : vector<8x512xf32>, i32 -> vector<8x512xf32>
    %106 = arith.truncf %105 : vector<8x512xf32> to vector<8x512xbf16>
    %c7_65 = arith.constant 7 : index
    %c0_66 = arith.constant 0 : index
    %107 = vector.load %arg2[%c7_65, %c0_66] : memref<9x512xbf16, #tpu.memory_space<vmem>>, vector<1x512xbf16>
    %108 = vector.broadcast %107 : vector<1x512xbf16> to vector<8x512xbf16>
    %109 = arith.mulf %106, %108 : vector<8x512xbf16>
    %c56_67 = arith.constant 56 : index
    %c0_68 = arith.constant 0 : index
    %110 = vector.load %arg11[%c56_67, %c0_68] : memref<72x512xbf16, #tpu.memory_space<vmem>>, vector<8x512xbf16>
    tpu.vector_store %arg11[%c56_67, %c0_68], %109 {strides = array<i32>} : memref<72x512xbf16, #tpu.memory_space<vmem>>, vector<8x512xbf16>,
    %c495_i32_69 = arith.constant 495 : i32
    %111 = tpu.dynamic_rotate %66 by %c495_i32_69 dim 1 : vector<8x512xf32>, i32 -> vector<8x512xf32>
    %112 = arith.truncf %111 : vector<8x512xf32> to vector<8x512xbf16>
    %c8_70 = arith.constant 8 : index
    %c0_71 = arith.constant 0 : index
    %113 = vector.load %arg2[%c8_70, %c0_71] : memref<9x512xbf16, #tpu.memory_space<vmem>>, vector<1x512xbf16>
    %114 = vector.broadcast %113 : vector<1x512xbf16> to vector<8x512xbf16>
    %115 = arith.mulf %112, %114 : vector<8x512xbf16>
    %c64_72 = arith.constant 64 : index
    %c0_73 = arith.constant 0 : index
    %116 = vector.load %arg11[%c64_72, %c0_73] : memref<72x512xbf16, #tpu.memory_space<vmem>>, vector<8x512xbf16>
    tpu.vector_store %arg11[%c64_72, %c0_73], %115 {strides = array<i32>} : memref<72x512xbf16, #tpu.memory_space<vmem>>, vector<8x512xbf16>,
    %c0_74 = arith.constant 0 : index
    %c0_75 = arith.constant 0 : index
    %117 = vector.load %arg7[%c0_74, %c0_75] : memref<8x72xbf16, #tpu.memory_space<vmem>>, vector<8x72xbf16>
    %c0_76 = arith.constant 0 : index
    %c0_77 = arith.constant 0 : index
    %118 = vector.load %arg11[%c0_76, %c0_77] : memref<72x512xbf16, #tpu.memory_space<vmem>>, vector<72x512xbf16>
    %cst_78 = arith.constant dense<0.000000e+00> : vector<8x512xf32>
    %119 = tpu.matmul %117, %118, %cst_78 {dimension_numbers = #tpu.dot_dimension_numbers<[1], [0], [0], [1], [0, 0, 1, 1], [], []>} : vector<8x72xbf16>, vector<72x512xbf16>, vector<8x512xf32> -> vector<8x512xf32>
    %c0_79 = arith.constant 0 : index
    %c0_80 = arith.constant 0 : index
    %120 = vector.load %arg8[%c0_79, %c0_80] : memref<8x1xf32, #tpu.memory_space<vmem>>, vector<8x1xf32>
    %121 = vector.broadcast %120 : vector<8x1xf32> to vector<8x512xf32>
    %122 = arith.mulf %119, %121 : vector<8x512xf32>
    %c0_81 = arith.constant 0 : index
    %c0_82 = arith.constant 0 : index
    %123 = vector.load %arg9[%c0_81, %c0_82] : memref<8x1xf32, #tpu.memory_space<vmem>>, vector<8x1xf32>
    %124 = vector.broadcast %123 : vector<8x1xf32> to vector<8x512xf32>
    %125 = arith.addf %122, %124 : vector<8x512xf32>
    %126 = arith.addf %1, %125 : vector<8x512xf32>
    %127 = vector.shape_cast %126 : vector<8x512xf32> to vector<1x8x512xf32>
    %c0_83 = arith.constant 0 : index
    %c0_84 = arith.constant 0 : index
    %c0_85 = arith.constant 0 : index
    %128 = vector.load %arg10[%c0_83, %c0_84, %c0_85] : memref<1x8x512xf32, #tpu.memory_space<vmem>>, vector<1x8x512xf32>
    tpu.vector_store %arg10[%c0_83, %c0_84, %c0_85], %127 {strides = array<i32>} : memref<1x8x512xf32, #tpu.memory_space<vmem>>, vector<1x8x512xf32>,
    return
  }
  func.func @transform_0(%arg0: i32) -> (i32, i32, i32) {
    %c0_i32 = arith.constant 0 : i32
    %c0_i32_0 = arith.constant 0 : i32
    %c0_i32_1 = arith.constant 0 : i32
    return %arg0, %c0_i32, %c0_i32_0 : i32, i32, i32
  }
  func.func @transform_1(%arg0: i32) -> (i32, i32) {
    %c0_i32 = arith.constant 0 : i32
    %c0_i32_0 = arith.constant 0 : i32
    %c0_i32_1 = arith.constant 0 : i32
    return %c0_i32, %c0_i32_0 : i32, i32
  }
  func.func @transform_2(%arg0: i32) -> (i32, i32) {
    %c0_i32 = arith.constant 0 : i32
    %c0_i32_0 = arith.constant 0 : i32
    %c0_i32_1 = arith.constant 0 : i32
    return %c0_i32, %c0_i32_0 : i32, i32
  }
  func.func @transform_3(%arg0: i32) -> (i32, i32) {
    %c0_i32 = arith.constant 0 : i32
    %c0_i32_0 = arith.constant 0 : i32
    %c0_i32_1 = arith.constant 0 : i32
    return %c0_i32, %c0_i32_0 : i32, i32
  }
  func.func @transform_4(%arg0: i32) -> (i32, i32) {
    %c0_i32 = arith.constant 0 : i32
    %c0_i32_0 = arith.constant 0 : i32
    %c0_i32_1 = arith.constant 0 : i32
    return %c0_i32, %c0_i32_0 : i32, i32
  }
  func.func @transform_5(%arg0: i32) -> i32 {
    %c0_i32 = arith.constant 0 : i32
    %c0_i32_0 = arith.constant 0 : i32
    return %c0_i32 : i32
  }
  func.func @transform_6(%arg0: i32) -> (i32, i32) {
    %c0_i32 = arith.constant 0 : i32
    %c0_i32_0 = arith.constant 0 : i32
    %c0_i32_1 = arith.constant 0 : i32
    return %c0_i32, %c0_i32_0 : i32, i32
  }
  func.func @transform_7(%arg0: i32) -> (i32, i32) {
    %c0_i32 = arith.constant 0 : i32
    %c0_i32_0 = arith.constant 0 : i32
    %c0_i32_1 = arith.constant 0 : i32
    return %c0_i32, %c0_i32_0 : i32, i32
  }
  func.func @transform_8(%arg0: i32) -> (i32, i32) {
    %c0_i32 = arith.constant 0 : i32
    %c0_i32_0 = arith.constant 0 : i32
    %c0_i32_1 = arith.constant 0 : i32
    return %c0_i32, %c0_i32_0 : i32, i32
  }
  func.func @transform_9(%arg0: i32) -> (i32, i32, i32) {
    %c0_i32 = arith.constant 0 : i32
    %c0_i32_0 = arith.constant 0 : i32
    %c0_i32_1 = arith.constant 0 : i32
    return %arg0, %c0_i32, %c0_i32_0 : i32, i32, i32
  }
}

</mosaic_0001>

<bundles_post_ra>
// kernel: tpu_custom_call.1
= control target key start
LH: loop header
LB: loop body
LE: loop exit
PB: predicated region body
PF: predicated region fallthrough
CT: control target
= control target key end

     0   :  { %15 = vsyncpa [#allocation5], 0  ;;  %s2934_s0 = inlined_call_operand.vmem [shape: f32[1,8,512], index: 0, kind: input, shape index: {}]   ;;  %s2935_s1 = inlined_call_operand.hbm [shape: bf16[9,512], index: 1, kind: input, shape index: {}]   ;;  %s2936_s2 = inlined_call_operand.vmem [shape: bf16[8,72], index: 2, kind: input, shape index: {}]   ;;  %s2937_s3 = inlined_call_operand.vmem [shape: f32[8,1], index: 3, kind: input, shape index: {}]   ;;  %s2938_s4 = inlined_call_operand.vmem [shape: f32[8,1], index: 4, kind: input, shape index: {}]   ;;  %s2939_s5 = inlined_call_operand.<no memory space> [shape: f32[1], index: 5, kind: input, shape index: {}]   ;;  %s2940_s6 = inlined_call_operand.vmem [shape: bf16[8,72], index: 6, kind: input, shape index: {}]   ;;  %s2941_s7 = inlined_call_operand.vmem [shape: f32[8,1], index: 7, kind: input, shape index: {}]   ;;  %s2942_s8 = inlined_call_operand.vmem [shape: f32[8,1], index: 8, kind: input, shape index: {}]   ;;  %s2943_s9 = inlined_call_operand.hbm [shape: f32[1,8,512], index: 9, kind: output, shape index: {}]  }
   0x1   :  { %16 = vsyncpa [#allocation6], 0  ;;  %s2284_s30 = smov [#allocation4]   ;;  %s2236_s13 = scalar_lea.hbm %s2935_s1, 512 }
   0x2   :  { %s24_s10 = sshll.u32 %s2284_s30, 4  ;;  %p2237_p0 = scmp.ne.s32.totalorder %s2935_s1, %s2236_s13  ;;  %s25_s10 = int_to_ptr.vmem [resolvable:$true] %s24_s10 }
   0x3   :  { %p2240_p1 = scmp.lt.u32.totalorder %s2236_s13, %s2935_s1 }
   0x5   :  { %p2242_p2 = pnand %p2240_p1, %p2237_p0 }
   0x7   :  { %2245 = shalt.err (!%p2242_p2)
}
   0x8   :  { %s2246_s18 = scalar_lea.vmem %s25_s10, 512  ;;  %p2251_p4 = scmp.lt.s32.totalorder %s25_s10, %s25_s10 }
   0x9   :  { %p2247_p3 = scmp.ne.s32.totalorder %s25_s10, %s2246_s18  ;;  %p2252_p5 = scmp.lt.s32.totalorder %s2246_s18, %s2246_s18 }
   0xb   :  { %p2253_p6 = por %p2252_p5, %p2251_p4 }
   0xd   :  { %p2254_p7 = pnand %p2253_p6, %p2247_p3 }
   0xf   :  { %2257 = shalt.err (!%p2254_p7)
}
  0x10   :  { %s2285_s19 = smov 256   ;;  %s2286_s20 = smov 16  }
  0x11   :  { %30 = dma.hbm_to_vmem [thread:$0]  %s2935_s1, 512, %s25_s10, [#allocation5], %s2285_s19, %s2285_s19, %s2286_s20  }
  0x12   :  { %2280 = dma.done.wait [#allocation5], 512  }
  0x13   :  { %2281 = vsyncadd [#allocation5], 4294966784  ;;  %v2362_v0 = vld [vmem:[%s2934_s0] sm:$0xff]  ;;  %v2367_v1 = vld [vmem:[%s2934_s0 + $0x8] sm:$0xff]  ;;  %s2287_s30 = smov 17   ;;  %s2288_s10 = smov 15   ;;  %v62_v9 = vlaneseq }
  0x14   :  { %v2372_v2 = vld [vmem:[%s2934_s0 + $0x10] sm:$0xff]  ;;  %v2016_v3 = vpack.i.bf16 %v2367_v1, %v2362_v0  ;;  %v2379_v4 = vld [vmem:[%s2934_s0 + $0x18] sm:$0xff]  ;;  %s2289_s11 = smov 1   ;;  %s2290_s12 = smov 127   ;;  %v2294_v6 = vmov 0   ;;  %v898_v7 = vld [vmem:[%s2937_s3] sm:$0xff] }
  0x15   :  { %v2021_v5 = vpack.i.bf16 %v2379_v4, %v2372_v2  ;;  %s2291_s13 = smov 113   ;;  %s2292_s14 = smov 112   ;;  %848 = vmatprep.mubr.bf16.mxu0 %v2294_v6  ;;  %889 = vmatprep.mubr.bf16.mxu1 %v2294_v6  ;;  %v908_v8 = vld [vmem:[%s2938_s4] sm:$0xff]  ;;  %v74_v12 = vld [vmem:[#allocation4 + $0x8] sm:$0x11]  ;;  %v2409_v14 = vshrl.u32 %v62_v9, 7 }
  0x16   :  { %2017 = vrot.lane.b32.xlu1 %v2016_v3, %s2286_s20  ;;  %2007 = vrot.lane.b32.xlu0 %v2016_v3, %s2287_s30  ;;  %s2293_s15 = smov 111   ;;  %v73_v10 = vld [vmem:[#allocation4] sm:$0x11]  ;;  %v149_v13 = vld [vmem:[#allocation4 + $0x8] sm:$0x11]  ;;  %v1809_v19 = vcombine.high %v74_v12, %v74_v12  ;;  %v2411_v21 = vand.u32 127, %v62_v9  ;;  %v1808_v22 = vcombine.low %v74_v12, %v74_v12 }
  0x17   :  { %2086 = vset.pattern.permute.xlu0 %v2294_v6  ;;  %2087 = vset.pattern.permute.xlu1 %v2294_v6  ;;  %v148_v11 = vld [vmem:[#allocation4] sm:$0x11]  ;;  %v1807_v15 = vcombine.high %v73_v10, %v73_v10  ;;  %v1806_v17 = vcombine.low %v73_v10, %v73_v10  ;;  %v1815_v20 = vcombine.high %v149_v13, %v149_v13  ;;  %v302_v24 = vld [vmem:[#allocation4] sm:$0x22]  ;;  %v303_v25 = vld [vmem:[#allocation4 + $0x8] sm:$0x22] }
  0x18   :  { %v1813_v16 = vcombine.high %v148_v11, %v148_v11  ;;  %v1812_v18 = vcombine.low %v148_v11, %v148_v11  ;;  %v1814_v23 = vcombine.low %v149_v13, %v149_v13  ;;  %v2414_v26 = vsub.s32 0, %v2409_v14  ;;  %v227_v30 = vld [vmem:[#allocation4] sm:$0x22]  ;;  %v228_v35 = vld [vmem:[#allocation4 + $0x8] sm:$0x22]  ;;  %s2295_s27 = smov [#allocation7]  }
  0x19   :  { %v2417_v27 = vsub.s32 1, %v2409_v14  ;;  %v93_v28 = vpack.i.b16 %v1807_v15, %v1807_v15  ;;  %v2420_v31 = vsub.s32 3, %v2409_v14  ;;  %v86_v32 = vpack.i.b16 %v1806_v17, %v1806_v17  ;;  %v399_v52 = vld [vmem:[#allocation4] sm:$0x44]  ;;  %v400_v57 = vld [vmem:[#allocation4 + $0x8] sm:$0x44] }
  0x1a   :  { %2022 = vrot.lane.b32.xlu1 %v2021_v5, %s2286_s20  ;;  %2012 = vrot.lane.b32.xlu0 %v2021_v5, %s2287_s30  ;;  %v169_v29 = vshrl.u32 %v1813_v16, 16  ;;  %v161_v33 = vshrl.u32 %v1812_v18, 16  ;;  %v107_v34 = vpack.i.b16 %v1809_v19, %v1809_v19  ;;  %v185_v36 = vshrl.u32 %v1815_v20, 16  ;;  %v553_v11 = vld [vmem:[#allocation4] sm:$0x88]  ;;  %s1797_s28 = sshll.u32 %s2295_s27, 4  ;;  %s1798_s28 = int_to_ptr.vmem [resolvable:$true] %s1797_s28 }
  0x1b   :  { %v1825_v37 = vcombine.high %v302_v24, %v302_v24  ;;  %v1827_v38 = vcombine.high %v303_v25, %v303_v25  ;;  %v1824_v39 = vcombine.low %v302_v24, %v302_v24  ;;  %v100_v40 = vpack.i.b16 %v1808_v22, %v1808_v22  ;;  %v478_v17 = vld [vmem:[#allocation4] sm:$0x88]  ;;  %p2263_p9 = scmp.lt.s32.totalorder %s1798_s28, %s1798_s28 }
  0x1c   :  { %v177_v41 = vshrl.u32 %v1814_v23, 16  ;;  %v1819_v42 = vcombine.high %v227_v30, %v227_v30  ;;  %v1826_v43 = vcombine.low %v303_v25, %v303_v25  ;;  %v2423_v44 = vrot.slane %v93_v28, %v2414_v26  ;;  %v554_v23 = vld [vmem:[#allocation4 + $0x8] sm:$0x88] }
  0x1d   :  { %v170_v45 = vpack.i.b16 %v169_v29, %v169_v29  ;;  %v1821_v46 = vcombine.high %v228_v35, %v228_v35  ;;  %v1818_v47 = vcombine.low %v227_v30, %v227_v30  ;;  %v2426_v48 = vrot.slane %v86_v32, %v2414_v26  ;;  %v479_v30 = vld [vmem:[#allocation4 + $0x8] sm:$0x88] }
  0x1e   :  { %2032 = vrot.lane.b32.xlu1 %v2021_v5, %s2288_s10  ;;  %2027 = vrot.lane.b32.xlu0 %v2016_v3, %s2288_s10  ;;  %v162_v49 = vpack.i.b16 %v161_v33, %v161_v33  ;;  %v2429_v50 = vrot.slane %v107_v34, %v2414_v26  ;;  %v1820_v51 = vcombine.low %v228_v35, %v228_v35  ;;  %v323_v54 = vshrl.u32 %v1825_v37, 16 }
  0x1f   :  { %v186_v53 = vpack.i.b16 %v185_v36, %v185_v36  ;;  %v339_v55 = vshrl.u32 %v1827_v38, 16  ;;  %v315_v56 = vshrl.u32 %v1824_v39, 16  ;;  %v2432_v58 = vrot.slane %v100_v40, %v2414_v26 }
  0x20   :  { %v178_v59 = vpack.i.b16 %v177_v41, %v177_v41  ;;  %v247_v60 = vpack.i.b16 %v1819_v42, %v1819_v42  ;;  %v331_v61 = vshrl.u32 %v1826_v43, 16  ;;  %v2435_v62 = vrot.slane %v170_v45, %v2414_v26 }
  0x21   :  { %v261_v63 = vpack.i.b16 %v1821_v46, %v1821_v46  ;;  %v1833_v9 = vcombine.high %v399_v52, %v399_v52  ;;  %v1834_v10 = vcombine.low %v400_v57, %v400_v57  ;;  %v2441_v12 = vrot.slane %v186_v53, %v2414_v26 }
  0x22   :  { %2042 = vrot.lane.b32.xlu1 %v2021_v5, %s2289_s11  ;;  %2037 = vrot.lane.b32.xlu0 %v2016_v3, %s2289_s11  ;;  %v324_v13 = vpack.i.b16 %v323_v54, %v323_v54  ;;  %v340_v15 = vpack.i.b16 %v339_v55, %v339_v55  ;;  %v316_v16 = vpack.i.b16 %v315_v56, %v315_v56  ;;  %vm64_vm0 = vcmp.lt.s32.totalorder %v2411_v21, 17  ;;  %v633_v56 = vld [vmem:[#allocation4 + $0x18] sm:$0x11] }
  0x23   :  { %v2444_v18 = vrot.slane %v178_v59, %v2414_v26  ;;  %v2447_v19 = vrot.slane %v247_v60, %v2417_v27  ;;  %v332_v20 = vpack.i.b16 %v331_v61, %v331_v61  ;;  %v1835_v22 = vcombine.high %v400_v57, %v400_v57 }
  0x24   :  { %v2450_v24 = vrot.slane %v261_v63, %v2417_v27  ;;  %v1845_v29 = vcombine.high %v553_v11, %v553_v11  ;;  %v420_v33 = vshrl.u32 %v1833_v9, 16  ;;  %v428_v34 = vshrl.u32 %v1834_v10, 16 }
  0x25   :  { %v1839_v35 = vcombine.high %v478_v17, %v478_v17  ;;  %v2459_v36 = vrot.slane %v324_v13, %v2417_v27  ;;  %v2462_v37 = vrot.slane %v340_v15, %v2417_v27  ;;  %v2465_v38 = vrot.slane %v316_v16, %v2417_v27 }
  0x26   :  { %2052 = vrot.lane.b32.xlu1 %v2021_v5, %s2290_s12  ;;  %2047 = vrot.lane.b32.xlu0 %v2016_v3, %s2290_s12  ;;  %v1847_v39 = vcombine.high %v554_v23, %v554_v23  ;;  %v2468_v40 = vrot.slane %v332_v20, %v2417_v27  ;;  %v436_v41 = vshrl.u32 %v1835_v22, 16  ;;  %v1841_v42 = vcombine.high %v479_v30, %v479_v30 }
  0x27   :  { %v1844_v43 = vcombine.low %v553_v11, %v553_v11  ;;  %vm139_vm1 = vcmp.lt.s32.totalorder %v2411_v21, 16  ;;  %v2474_v45 = vpack.c.bf16 %v2367_v1, %v2362_v0  ;;  %v421_v53 = vpack.i.b16 %v420_v33, %v420_v33 }
  0x28   :  { %v429_v54 = vpack.i.b16 %v428_v34, %v428_v34  ;;  %v498_v55 = vpack.i.b16 %v1839_v35, %v1839_v35  ;;  %v2481_v57 = vpack.c.bf16 %v2379_v4, %v2372_v2  ;;  %v590_v59 = vshrl.u32 %v1847_v39, 16 }
  0x29   :  { %v1840_v60 = vcombine.low %v479_v30, %v479_v30  ;;  %v1846_v61 = vcombine.low %v554_v23, %v554_v23  ;;  %v437_v0 = vpack.i.b16 %v436_v41, %v436_v41  ;;  %v512_v1 = vpack.i.b16 %v1841_v42, %v1841_v42 }
  0x2a   :  { %2062 = vrot.lane.b32.xlu1 %v2021_v5, %s2291_s13  ;;  %2057 = vrot.lane.b32.xlu0 %v2016_v3, %s2291_s13  ;;  %v566_v63 = vshrl.u32 %v1844_v43, 16  ;;  %v1853_v9 = vcombine.high %v633_v56, %v633_v56  ;;  %v2493_v4 = vrot.slane %v498_v55, %v2420_v31  ;;  %v591_v13 = vpack.i.b16 %v590_v59, %v590_v59 }
  0x2b   :  { %v505_v15 = vpack.i.b16 %v1840_v60, %v1840_v60  ;;  %v582_v16 = vshrl.u32 %v1846_v61, 16  ;;  %v2499_v22 = vrot.slane %v512_v1, %v2420_v31  ;;  %vm218_vm2 = vcmp.lt.s32.totalorder %v2411_v21, 15 }
  0x2c   :  { %v567_v23 = vpack.i.b16 %v566_v63, %v566_v63  ;;  %v666_v35 = vpack.i.b16 %v1853_v9, %v1853_v9  ;;  %vm293_vm3 = vcmp.lt.s32.totalorder %v2411_v21, 1  ;;  %vm390_vm4 = vcmp.lt.s32.totalorder %v2411_v21, 127 }
  0x2d   :  { %vm469_vm5 = vcmp.lt.s32.totalorder %v2411_v21, 113  ;;  %vm544_vm6 = vcmp.lt.s32.totalorder %v2411_v21, 112  ;;  %vm623_vm7 = vcmp.lt.s32.totalorder %v2411_v21, 111  ;;  %vm803_vm8 = vcmask 1043456  }
  0x2e   :  { %2072 = vrot.lane.b32.xlu1 %v2021_v5, %s2292_s14  ;;  %2067 = vrot.lane.b32.xlu0 %v2016_v3, %s2292_s14  ;;  %v2538_v63 = vrot.slane %v666_v35, %v2414_v26  ;;  %vm799_vm9 = vcmask 588800  }
  0x32   :  { %2082 = vrot.lane.b32.xlu1 %v2021_v5, %s2293_s15  ;;  %2077 = vrot.lane.b32.xlu0 %v2016_v3, %s2293_s15  ;;  %v240_v3 = vpack.i.b16 %v1818_v47, %v1818_v47  ;;  %v1832_v5 = vcombine.low %v399_v52, %v399_v52  ;;  %v574_v47 = vshrl.u32 %v1845_v29, 16  ;;  %v2477_v52 = vsub.s32 2, %v2409_v14 }
  0x34   :  { %v2453_v25 = vrot.slane %v240_v3, %v2417_v27  ;;  %v412_v28 = vshrl.u32 %v1832_v5, 16  ;;  %v575_v5 = vpack.i.b16 %v574_v47, %v574_v47  ;;  %v2487_v11 = vrot.slane %v421_v53, %v2477_v52 }
  0x35   :  { %v2490_v2 = vrot.slane %v429_v54, %v2477_v52  ;;  %v2496_v20 = vrot.slane %v437_v0, %v2477_v52  ;;  %v2517_v47 = vrot.slane %v591_v13, %v2420_v31 }
  0x36   :  { %901 = vperm.xlu0 %2086, %v898_v7   ;;  %911 = vperm.xlu1 %2087, %v908_v8   ;;  %v2438_v7 = vrot.slane %v162_v49, %v2414_v26  ;;  %v254_v8 = vpack.i.b16 %v1820_v51, %v1820_v51  ;;  %v413_v46 = vpack.i.b16 %v412_v28, %v412_v28  ;;  %v632_v51 = vld [vmem:[#allocation4 + $0x10] sm:$0x11] }
  0x37   :  { %v1838_v49 = vcombine.low %v478_v17, %v478_v17  ;;  %v1851_v3 = vcombine.high %v632_v51, %v632_v51  ;;  %v1850_v14 = vcombine.low %v632_v51, %v632_v51  ;;  %v1852_v17 = vcombine.low %v633_v56, %v633_v56 }
  0x38   :  { %v2456_v32 = vrot.slane %v254_v8, %v2417_v27  ;;  %v2484_v10 = vrot.slane %v413_v46, %v2477_v52  ;;  %v2507_v33 = vrot.slane %v575_v5, %v2420_v31  ;;  %v583_v51 = vpack.i.b16 %v582_v16, %v582_v16 }
  0x39   :  { %v491_v8 = vpack.i.b16 %v1838_v49, %v1838_v49  ;;  %v652_v28 = vpack.i.b16 %v1851_v3, %v1851_v3  ;;  %v645_v39 = vpack.i.b16 %v1850_v14, %v1850_v14  ;;  %v2520_v49 = vrot.slane %v505_v15, %v2420_v31 }
  0x3a   :  { %v659_v53 = vpack.i.b16 %v1852_v17, %v1852_v17  ;;  %v2531_v56 = vrot.slane %v567_v23, %v2420_v31  ;;  %v2546_v16 = vrot.slane %v583_v51, %v2420_v31 }
  0x3b   :  { %v2510_v34 = vrot.slane %v491_v8, %v2420_v31  ;;  %v2534_v59 = vrot.slane %v652_v28, %v2414_v26  ;;  %v2541_v3 = vrot.slane %v645_v39, %v2414_v26 }
  0x3c   :  { %v2549_v17 = vrot.slane %v659_v53, %v2414_v26 }
  0x88   :  { %v2501_v29 = vpop.permute.xlu1 %2017  ;;  %v2503_v30 = vpop.permute.xlu0 %2007 }
  0x89   :  { %v2020_v41 = vunpack.i.h.bf16 %v2501_v29  ;;  %v2019_v42 = vunpack.i.l.bf16 %v2501_v29  ;;  %v2010_v43 = vunpack.i.h.bf16 %v2503_v30  ;;  %v2009_v46 = vunpack.i.l.bf16 %v2503_v30 }
  0x8b   :  { %v67_v54 = vsel %vm64_vm0, %v2009_v46, %v2010_v43  ;;  %v142_v55 = vsel %vm139_vm1, %v2019_v42, %v2020_v41 }
  0x8c   :  { %v2023_v60 = vpop.permute.xlu1 %2022  ;;  %v2013_v61 = vpop.permute.xlu0 %2012  ;;  %v70_v0 = vpack.c.bf16 %v67_v54, %v67_v54  ;;  %v145_v1 = vpack.c.bf16 %v142_v55, %v142_v55 }
  0x8d   :  { %v2025_v5 = vunpack.i.h.bf16 %v2023_v60  ;;  %v2024_v8 = vunpack.i.l.bf16 %v2023_v60  ;;  %v2015_v9 = vunpack.i.h.bf16 %v2013_v61  ;;  %v2014_v14 = vunpack.i.l.bf16 %v2013_v61 }
  0x8e   :  { %v114_v13 = vmul.bf16 %v2423_v44, %v70_v0  ;;  %v193_v15 = vmul.bf16 %v2435_v62, %v145_v1 }
  0x8f   :  { %v68_v23 = vsel %vm64_vm0, %v2015_v9, %v2009_v46  ;;  %v143_v28 = vsel %vm139_vm1, %v2025_v5, %v2019_v42  ;;  %v65_v35 = vsel %vm64_vm0, %v2014_v14, %v2015_v9  ;;  %v140_v44 = vsel %vm139_vm1, %v2024_v8, %v2025_v5 }
  0x90   :  { %v2033_v39 = vpop.permute.xlu1 %2032  ;;  %v2028_v62 = vpop.permute.xlu0 %2027  ;;  %v1959_v54 = vcombine.low %v114_v13, %v193_v15  ;;  %v69_v51 = vpack.c.bf16 %v68_v23, %v68_v23  ;;  %v144_v55 = vpack.c.bf16 %v143_v28, %v143_v28  ;;  %v72_v60 = vpack.c.bf16 %v65_v35, %v65_v35 }
  0x91   :  { %v2035_v53 = vunpack.i.h.bf16 %v2033_v39  ;;  %v2034_v61 = vunpack.i.l.bf16 %v2033_v39  ;;  %v2030_v0 = vunpack.i.h.bf16 %v2028_v62  ;;  %v2029_v1 = vunpack.i.l.bf16 %v2028_v62 }
  0x92   :  { %816 = vmatprep.subr.bf16.mxu0 %v1959_v54  ;;  %v113_v42 = vmul.bf16 %v2426_v48, %v69_v51  ;;  %v192_v46 = vmul.bf16 %v2438_v7, %v144_v55  ;;  %v116_v9 = vmul.bf16 %v2429_v50, %v72_v60  ;;  %v147_v5 = vpack.c.bf16 %v140_v44, %v140_v44 }
  0x93   :  { %v219_v13 = vsel %vm218_vm2, %v2034_v61, %v2035_v53  ;;  %v2567_v15 = vsel %vm218_vm2, %v2030_v0, %v2034_v61  ;;  %v221_v23 = vsel %vm218_vm2, %v2029_v1, %v2030_v0  ;;  %v222_v28 = vsel %vm218_vm2, %v2035_v53, %v2029_v1 }
  0x94   :  { %v226_v35 = vpack.c.bf16 %v219_v13, %v219_v13  ;;  %v225_v48 = vpack.c.bf16 %v2567_v15, %v2567_v15  ;;  %v223_v7 = vpack.c.bf16 %v222_v28, %v222_v28  ;;  %v224_v50 = vpack.c.bf16 %v221_v23, %v221_v23  ;;  %v2043_v44 = vpop.permute.xlu1 %2042  ;;  %v2038_v39 = vpop.permute.xlu0 %2037 }
  0x95   :  { %v2045_v62 = vunpack.i.h.bf16 %v2043_v44  ;;  %v2044_v54 = vunpack.i.l.bf16 %v2043_v44  ;;  %v2040_v51 = vunpack.i.h.bf16 %v2038_v39  ;;  %v2039_v55 = vunpack.i.l.bf16 %v2038_v39 }
  0x96   :  { %v1958_v60 = vcombine.low %v113_v42, %v192_v46  ;;  %v195_v61 = vmul.bf16 %v2441_v12, %v147_v5  ;;  %v66_v53 = vsel %vm64_vm0, %v2010_v43, %v2014_v14  ;;  %v141_v0 = vsel %vm139_vm1, %v2020_v41, %v2024_v8 }
  0x97   :  { %v294_v1 = vsel %vm293_vm3, %v2044_v54, %v2045_v62  ;;  %v295_v13 = vsel %vm293_vm3, %v2040_v51, %v2044_v54  ;;  %v296_v42 = vsel %vm293_vm3, %v2039_v55, %v2040_v51  ;;  %v297_v12 = vsel %vm293_vm3, %v2045_v62, %v2039_v55 }
  0x98   :  { %v301_v30 = vpack.c.bf16 %v294_v1, %v294_v1  ;;  %v300_v46 = vpack.c.bf16 %v295_v13, %v295_v13  ;;  %v298_v43 = vpack.c.bf16 %v297_v12, %v297_v12  ;;  %v299_v14 = vpack.c.bf16 %v296_v42, %v296_v42  ;;  %817 = vmatpush1.bf16.msra.mxu0 %v1958_v60  ;;  %v2053_v29 = vpop.permute.xlu1 %2052  ;;  %v2048_v5 = vpop.permute.xlu0 %2047 }
  0x99   :  { %v1961_v41 = vcombine.low %v116_v9, %v195_v61  ;;  %v71_v8 = vpack.c.bf16 %v66_v53, %v66_v53  ;;  %v146_v15 = vpack.c.bf16 %v141_v0, %v141_v0  ;;  %v2055_v23 = vunpack.i.h.bf16 %v2053_v29 }
  0x9a   :  { %v2054_v28 = vunpack.i.l.bf16 %v2053_v29  ;;  %v2050_v44 = vunpack.i.h.bf16 %v2048_v5  ;;  %v2049_v39 = vunpack.i.l.bf16 %v2048_v5  ;;  %v268_v54 = vmul.bf16 %v2447_v19, %v224_v50 }
  0x9b   :  { %857 = vmatprep.subr.bf16.mxu1 %v1961_v41  ;;  %v115_v62 = vmul.bf16 %v2432_v58, %v71_v8  ;;  %v194_v51 = vmul.bf16 %v2444_v18, %v146_v15  ;;  %v347_v55 = vmul.bf16 %v2459_v36, %v299_v14  ;;  %v270_v60 = vmul.bf16 %v2450_v24, %v226_v35 }
  0x9c   :  { %v391_v9 = vsel %vm390_vm4, %v2054_v28, %v2055_v23  ;;  %v392_v61 = vsel %vm390_vm4, %v2050_v44, %v2054_v28  ;;  %v393_v19 = vsel %vm390_vm4, %v2049_v39, %v2050_v44  ;;  %v394_v50 = vsel %vm390_vm4, %v2055_v23, %v2049_v39  ;;  %v2063_v53 = vpop.permute.xlu1 %2062  ;;  %v2058_v58 = vpop.permute.xlu0 %2057 }
  0x9d   :  { %v1960_v0 = vcombine.low %v115_v62, %v194_v51  ;;  %v397_v18 = vpack.c.bf16 %v391_v9, %v391_v9  ;;  %v396_v1 = vpack.c.bf16 %v392_v61, %v392_v61  ;;  %v395_v36 = vpack.c.bf16 %v393_v19, %v393_v19 }
  0x9e   :  { %v398_v13 = vpack.c.bf16 %v394_v50, %v394_v50  ;;  %v2065_v24 = vunpack.i.h.bf16 %v2063_v53  ;;  %v2064_v35 = vunpack.i.l.bf16 %v2063_v53  ;;  %v2060_v42 = vunpack.i.h.bf16 %v2058_v58 }
  0x9f   :  { %858 = vmatpush1.bf16.msra.mxu1 %v1960_v0  ;;  %v2059_v12 = vunpack.i.l.bf16 %v2058_v58  ;;  %v1963_v14 = vcombine.low %v268_v54, %v347_v55  ;;  %v349_v29 = vmul.bf16 %v2462_v37, %v301_v30  ;;  %v267_v5 = vmul.bf16 %v2453_v25, %v223_v7 }
  0xa0   :  { %v470_v41 = vsel %vm469_vm5, %v2064_v35, %v2065_v24  ;;  %v471_v8 = vsel %vm469_vm5, %v2060_v42, %v2064_v35  ;;  %v346_v15 = vmul.bf16 %v2465_v38, %v298_v43  ;;  %v269_v23 = vmul.bf16 %v2456_v32, %v225_v48  ;;  %v2073_v28 = vpop.permute.xlu1 %2072  ;;  %v2068_v44 = vpop.permute.xlu0 %2067 }
  0xa1   :  { %v476_v39 = vpack.c.bf16 %v470_v41, %v470_v41  ;;  %v475_v62 = vpack.c.bf16 %v471_v8, %v471_v8  ;;  %v472_v54 = vsel %vm469_vm5, %v2059_v12, %v2060_v42  ;;  %v473_v25 = vsel %vm469_vm5, %v2065_v24, %v2059_v12  ;;  %818 = vmatprep.subr.bf16.mxu0 %v1963_v14 }
  0xa2   :  { %v474_v37 = vpack.c.bf16 %v472_v54, %v472_v54  ;;  %v477_v7 = vpack.c.bf16 %v473_v25, %v473_v25  ;;  %v1965_v30 = vcombine.low %v270_v60, %v349_v29  ;;  %v1962_v51 = vcombine.low %v267_v5, %v346_v15 }
  0xa3   :  { %v348_v55 = vmul.bf16 %v2468_v40, %v300_v46  ;;  %v2075_v38 = vunpack.i.h.bf16 %v2073_v28  ;;  %v2074_v43 = vunpack.i.l.bf16 %v2073_v28  ;;  %v2070_v32 = vunpack.i.h.bf16 %v2068_v44 }
  0xa4   :  { %859 = vmatprep.subr.bf16.mxu1 %v1965_v30  ;;  %819 = vmatpush1.bf16.msra.mxu0 %v1962_v51  ;;  %v2069_v48 = vunpack.i.l.bf16 %v2068_v44  ;;  %v2083_v9 = vpop.permute.xlu1 %2082  ;;  %v2078_v61 = vpop.permute.xlu0 %2077  ;;  %v443_v19 = vmul.bf16 %v2484_v10, %v395_v36  ;;  %v444_v50 = vmul.bf16 %v2487_v11, %v396_v1  ;;  %v445_v53 = vmul.bf16 %v2490_v2, %v397_v18 }
  0xa5   :  { %v1964_v58 = vcombine.low %v269_v23, %v348_v55  ;;  %v545_v60 = vsel %vm544_vm6, %v2074_v43, %v2075_v38  ;;  %v546_v40 = vsel %vm544_vm6, %v2070_v32, %v2074_v43  ;;  %v2085_v46 = vunpack.i.h.bf16 %v2083_v9 }
  0xa6   :  { %v551_v0 = vpack.c.bf16 %v545_v60, %v545_v60  ;;  %v550_v24 = vpack.c.bf16 %v546_v40, %v546_v40  ;;  %v547_v35 = vsel %vm544_vm6, %v2069_v48, %v2070_v32  ;;  %v548_v10 = vsel %vm544_vm6, %v2075_v38, %v2069_v48 }
  0xa7   :  { %860 = vmatpush1.bf16.msra.mxu1 %v1964_v58  ;;  %v549_v11 = vpack.c.bf16 %v547_v35, %v547_v35  ;;  %v552_v1 = vpack.c.bf16 %v548_v10, %v548_v10  ;;  %v2084_v2 = vunpack.i.l.bf16 %v2083_v9  ;;  %v2080_v18 = vunpack.i.h.bf16 %v2078_v61 }
  0xa8   :  { %v2079_v36 = vunpack.i.l.bf16 %v2078_v61  ;;  %v1836_v42 = vcombine.low %v443_v19, %v444_v50  ;;  %v446_v12 = vmul.bf16 %v2496_v20, %v398_v13  ;;  %v1966_v14 = vcombine.low %v2474_v45, %v443_v19 }
  0xa9   :  { %v624_v29 = vsel %vm623_vm7, %v2084_v2, %v2085_v46  ;;  %v625_v5 = vsel %vm623_vm7, %v2080_v18, %v2084_v2  ;;  %v1967_v41 = vcombine.low %v2481_v57, %v445_v53  ;;  %v519_v8 = vmul.bf16 %v2493_v4, %v475_v62 }
  0xaa   :  { %v629_v15 = vpack.c.bf16 %v625_v5, %v625_v5  ;;  %v626_v23 = vsel %vm623_vm7, %v2079_v36, %v2080_v18  ;;  %v627_v28 = vsel %vm623_vm7, %v2085_v46, %v2079_v36  ;;  %v1865_v20 = vcombine.high %v2474_v45, %v1836_v42 }
  0xab   :  { %v631_v13 = vpack.c.bf16 %v627_v28, %v627_v28  ;;  %v1837_v44 = vcombine.low %v445_v53, %v446_v12  ;;  %v598_v54 = vmul.bf16 %v2507_v33, %v550_v24  ;;  %v521_v25 = vmul.bf16 %v2499_v22, %v477_v7 }
  0xac   :  { %820 = vmatprep.subr.bf16.mxu0 %v1865_v20  ;;  %v600_v30 = vmul.bf16 %v2517_v47, %v552_v1  ;;  %v518_v4 = vmul.bf16 %v2510_v34, %v474_v37  ;;  %v597_v62 = vmul.bf16 %v2531_v56, %v549_v11  ;;  %v520_v51 = vmul.bf16 %v2520_v49, %v476_v39  ;;  %v1763_v20 = vld [vmem:[%s2941_s7] sm:$0xff] }
  0xad   :  { %v1867_v55 = vcombine.high %v2481_v57, %v1837_v44  ;;  %821 = vmatpush1.bf16.msra.mxu0 %v1966_v14  ;;  %v1969_v38 = vcombine.low %v519_v8, %v598_v54  ;;  %v599_v45 = vmul.bf16 %v2546_v16, %v551_v0  ;;  %v673_v43 = vmul.bf16 %v2534_v59, %v629_v15  ;;  %v1021_v44 = vld [vmem:[#allocation4] sm:$0x11]  ;;  %v1022_v54 = vld [vmem:[#allocation4 + $0x8] sm:$0x11] }
  0xae   :  { %v1971_v33 = vcombine.low %v521_v25, %v600_v30  ;;  %v1968_v32 = vcombine.low %v518_v4, %v597_v62  ;;  %v675_v22 = vmul.bf16 %v2538_v63, %v631_v13  ;;  %v628_v7 = vpack.c.bf16 %v626_v23, %v626_v23  ;;  %v1773_v13 = vld [vmem:[%s2942_s8] sm:$0xff]  ;;  %v948_v30 = vld [vmem:[#allocation4 + $0x8] sm:$0x11] }
  0xaf   :  { %861 = vmatprep.subr.bf16.mxu1 %v1867_v55  ;;  %822 = vmatprep.subr.bf16.mxu0 %v1969_v38  ;;  %v1973_v34 = vcombine.low %v673_v43, %v673_v43  ;;  %v630_v47 = vpack.c.bf16 %v624_v29, %v624_v29  ;;  %v1970_v49 = vcombine.low %v520_v51, %v599_v45  ;;  %v922_v53 = vstv %s2939_s5  ;;  %v947_v25 = vld [vmem:[#allocation4] sm:$0x11]  ;;  %v1099_v51 = vld [vmem:[#allocation4] sm:$0x22]  ;;  %v1174_v38 = vld [vmem:[#allocation4 + $0x8] sm:$0x22] }
  0xb0   :  { %862 = vmatpush1.bf16.msra.mxu1 %v1967_v41  ;;  %v672_v57 = vmul.bf16 %v2541_v3, %v628_v7  ;;  %v1975_v56 = vcombine.low %v675_v22, %v675_v22  ;;  %v690_v3 = vld [vmem:[%s2936_s2] sm:$0xf]  ;;  %v1886_v4 = vcombine.low %v1021_v44, %v1021_v44  ;;  %v1888_v62 = vcombine.low %v1022_v54, %v1022_v54 }
  0xb1   :  { %863 = vmatprep.subr.bf16.mxu1 %v1971_v33  ;;  %823 = vmatpush1.bf16.msra.mxu0 %v1968_v32  ;;  %v674_v16 = vmul.bf16 %v2549_v17, %v630_v47  ;;  %v1173_v55 = vld [vmem:[#allocation4] sm:$0x22]  ;;  %v1880_v45 = vcombine.low %v947_v25, %v947_v25  ;;  %v1882_v43 = vcombine.low %v948_v30, %v948_v30  ;;  %v1100_v33 = vld [vmem:[#allocation4 + $0x8] sm:$0x22] }
  0xb2   :  { %1876 = vmatprep.subr.msk.bf16.mxu0 %vm803_vm8, %v1973_v34  ;;  %v1972_v59 = vcombine.low %v672_v57, %v672_v57  ;;  %v1034_v32 = vshrl.u32 %v1886_v4, 16  ;;  %v1050_v22 = vshrl.u32 %v1888_v62, 16  ;;  %v1881_v7 = vcombine.high %v947_v25, %v947_v25 }
  0xb3   :  { %v1974_v39 = vcombine.low %v674_v16, %v674_v16  ;;  %v1892_v34 = vcombine.low %v1099_v51, %v1099_v51  ;;  %v1898_v47 = vcombine.low %v1173_v55, %v1173_v55  ;;  %v1894_v57 = vcombine.low %v1100_v33, %v1100_v33 }
  0xb4   :  { %864 = vmatpush1.bf16.msra.mxu1 %v1970_v49  ;;  %v805_v63 = vsel %vm803_vm8, %v1972_v59, 0  ;;  %v1900_v49 = vcombine.low %v1174_v38, %v1174_v38  ;;  %v960_v16 = vpack.i.b16 %v1880_v45, %v1880_v45  ;;  %v974_v59 = vpack.i.b16 %v1882_v43, %v1882_v43 }
  0xb5   :  { %1878 = vmatprep.subr.msk.bf16.mxu1 %vm803_vm8, %v1975_v56  ;;  %825 = vmatpush1.bf16.msra.mxu0 %v805_v63  ;;  %v811_v37 = vsel %vm803_vm8, %v1974_v39, 0  ;;  %v902_v17 = vpop.permute.xlu0 %901  ;;  %v912_v9 = vpop.permute.xlu1 %911  ;;  %v1887_v56 = vcombine.high %v1021_v44, %v1021_v44  ;;  %v1035_v39 = vpack.i.b16 %v1034_v32, %v1034_v32  ;;  %v1051_v63 = vpack.i.b16 %v1050_v22, %v1050_v22 }
  0xb8   :  { %866 = vmatpush1.bf16.msra.mxu1 %v811_v37  ;;  %1877 = vmatmul.mubr.msk.bf16.vlgmr.msra.gmra.mrb[0].mxu0 %vm799_vm9, %v690_v3  ;;  %v967_v37 = vpack.i.b16 %v1881_v7, %v1881_v7 }
  0xb9   :  { %1713 = vmatprep.mubr.bf16.mxu0 %v2294_v6 }
  0xbb   :  { %1879 = vmatmul.mubr.msk.bf16.vlgmr.msra.gmra.mrb[0].mxu1 %vm799_vm9, %v690_v3  ;;  %v1883_v3 = vcombine.high %v948_v30, %v948_v30 }
  0xbc   :  { %1754 = vmatprep.mubr.bf16.mxu1 %v2294_v6 }
 0x18b   :  { %v850_v48 = vpop.f32.mrb[0].mxu0 }
 0x18c   :  { %v904_v61 = vmul.f32 %v902_v17, %v850_v48  ;;  %v852_v19 = vpop.f32.mrb[1].mxu0  ;;  %v1186_v48 = vshrl.u32 %v1898_v47, 16 }
 0x18d   :  { %v905_v50 = vmul.f32 %v902_v17, %v852_v19  ;;  %v854_v58 = vpop.f32.mrb[2].mxu0  ;;  %v1042_v19 = vshrl.u32 %v1887_v56, 16 }
 0x18e   :  { %v891_v60 = vpop.f32.mrb[0].mxu1  ;;  %v914_v40 = vadd.f32 %v912_v9, %v904_v61  ;;  %v855_v46 = vpop.f32.mrb[3].mxu0  ;;  %v1126_v61 = vpack.i.b16 %v1894_v57, %v1894_v57  ;;  %v1889_v58 = vcombine.high %v1022_v54, %v1022_v54 }
 0x18f   :  { %v906_v0 = vmul.f32 %v902_v17, %v891_v60  ;;  %v893_v24 = vpop.f32.mrb[1].mxu1  ;;  %v915_v35 = vadd.f32 %v912_v9, %v905_v50  ;;  %v2698_v50 = vrot.slane %v960_v16, %v2414_v26  ;;  %v1899_v60 = vcombine.high %v1173_v55, %v1173_v55  ;;  %v1421_v55 = vld [vmem:[#allocation4] sm:$0x88] }
 0x190   :  { %v907_v10 = vmul.f32 %v902_v17, %v893_v24  ;;  %vm918_vm10 = vcmp.gt.f32.partialorder %v914_v40, 0.0  ;;  %v923_v6 = vmul.f32 %v922_v53, %v914_v40  ;;  %v895_v11 = vpop.f32.mrb[2].mxu1  ;;  %v1112_v17 = vpack.i.b16 %v1892_v34, %v1892_v34 }
 0x191   :  { %v916_v1 = vadd.f32 %v912_v9, %v906_v0  ;;  %vm919_vm11 = vcmp.gt.f32.partialorder %v915_v35, 0.0  ;;  %v924_v2 = vmul.f32 %v922_v53, %v915_v35  ;;  %v896_v18 = vpop.f32.mrb[3].mxu1  ;;  %v2707_v46 = vrot.slane %v1051_v63, %v2414_v26 }
 0x192   :  { %v917_v36 = vadd.f32 %v912_v9, %v907_v10  ;;  %v927_v42 = vsel %vm918_vm10, %v914_v40, %v923_v6  ;;  %v1202_v9 = vshrl.u32 %v1900_v49, 16  ;;  %v2704_v40 = vrot.slane %v1035_v39, %v2414_v26  ;;  %v1269_v10 = vld [vmem:[#allocation4] sm:$0x44]  ;;  %v1270_v18 = vld [vmem:[#allocation4 + $0x8] sm:$0x44] }
 0x193   :  { %vm920_vm12 = vcmp.gt.f32.partialorder %v916_v1, 0.0  ;;  %v925_v12 = vmul.f32 %v922_v53, %v916_v1  ;;  %v928_v14 = vsel %vm919_vm11, %v915_v35, %v924_v2  ;;  %v2710_v0 = vrot.slane %v967_v37, %v2414_v26  ;;  %v1348_v35 = vld [vmem:[#allocation4 + $0x8] sm:$0x88] }
 0x194   :  { %vm921_vm13 = vcmp.gt.f32.partialorder %v917_v36, 0.0  ;;  %v926_v29 = vmul.f32 %v922_v53, %v917_v36  ;;  %v2088_v5 = vpack.i.bf16 %v928_v14, %v927_v42  ;;  %v2678_v23 = vpack.c.bf16 %v928_v14, %v927_v42 }
 0x195   :  { %v929_v41 = vsel %vm920_vm12, %v916_v1, %v925_v12  ;;  %v2701_v53 = vrot.slane %v974_v59, %v2414_v26  ;;  %v981_v24 = vpack.i.b16 %v1883_v3, %v1883_v3  ;;  %v2713_v6 = vrot.slane %v1112_v17, %v2417_v27  ;;  %v1347_v12 = vld [vmem:[#allocation4] sm:$0x88] }
 0x196   :  { %v930_v8 = vsel %vm921_vm13, %v917_v36, %v926_v29  ;;  %2089 = vrot.lane.b32.xlu1 %v2088_v5, %s2287_s30  ;;  %v1187_v11 = vpack.i.b16 %v1186_v48, %v1186_v48  ;;  %v1203_v1 = vpack.i.b16 %v1202_v9, %v1202_v9  ;;  %v1901_v2 = vcombine.high %v1174_v38, %v1174_v38 }
 0x197   :  { %v2093_v15 = vpack.i.bf16 %v930_v8, %v929_v41  ;;  %v2680_v28 = vpack.c.bf16 %v930_v8, %v929_v41  ;;  %v2716_v36 = vrot.slane %v1126_v61, %v2417_v27  ;;  %v1043_v42 = vpack.i.b16 %v1042_v19, %v1042_v19 }
 0x198   :  { %v1893_v14 = vcombine.high %v1099_v51, %v1099_v51  ;;  %v1895_v29 = vcombine.high %v1100_v33, %v1100_v33  ;;  %v2718_v41 = vcombine.low %v1348_v35, %v1348_v35  ;;  %v1194_v8 = vshrl.u32 %v1899_v60, 16  ;;  %v1499_v60 = vld [vmem:[#allocation4 + $0x10] sm:$0x11] }
 0x199   :  { %2094 = vrot.lane.b32.xlu0 %v2093_v15, %s2287_s30  ;;  %v1907_v44 = vcombine.high %v1269_v10, %v1269_v10  ;;  %v1908_v54 = vcombine.low %v1270_v18, %v1270_v18  ;;  %v1909_v25 = vcombine.high %v1270_v18, %v1270_v18  ;;  %v2724_v30 = vrot.slane %v1187_v11, %v2417_v27 }
 0x19a   :  { %2099 = vrot.lane.b32.xlu1 %v2088_v5, %s2286_s20  ;;  %v2727_v4 = vrot.slane %v1203_v1, %v2417_v27  ;;  %v1912_v62 = vcombine.low %v1347_v12, %v1347_v12  ;;  %v1210_v51 = vshrl.u32 %v1901_v2, 16  ;;  %v2730_v38 = vrot.slane %v1043_v42, %v2414_v26 }
 0x19b   :  { %v1119_v45 = vpack.i.b16 %v1893_v14, %v1893_v14  ;;  %v1133_v43 = vpack.i.b16 %v1895_v29, %v1895_v29  ;;  %v1374_v22 = vpack.i.b16 %v2718_v41, %v2718_v41  ;;  %v1195_v7 = vpack.i.b16 %v1194_v8, %v1194_v8 }
 0x19c   :  { %v1918_v47 = vcombine.low %v1421_v55, %v1421_v55  ;;  %v1290_v49 = vshrl.u32 %v1907_v44, 16  ;;  %v1298_v57 = vshrl.u32 %v1908_v54, 16  ;;  %v1306_v56 = vshrl.u32 %v1909_v25, 16 }
 0x19d   :  { %2104 = vrot.lane.b32.xlu0 %v2093_v15, %s2286_s20  ;;  %v1360_v16 = vpack.i.b16 %v1912_v62, %v1912_v62  ;;  %v1211_v59 = vpack.i.b16 %v1210_v51, %v1210_v51  ;;  %v1919_v39 = vcombine.high %v1421_v55, %v1421_v55  ;;  %v2735_v37 = vrot.slane %v1119_v45, %v2417_v27 }
 0x19e   :  { %2109 = vrot.lane.b32.xlu1 %v2088_v5, %s2288_s10  ;;  %v2738_v3 = vrot.slane %v1133_v43, %v2417_v27  ;;  %v1913_v48 = vcombine.high %v1347_v12, %v1347_v12  ;;  %v2744_v61 = vrot.slane %v1195_v7, %v2417_v27  ;;  %v1291_v11 = vpack.i.b16 %v1290_v49, %v1290_v49 }
 0x19f   :  { %v1299_v1 = vpack.i.b16 %v1298_v57, %v1298_v57  ;;  %v1307_v2 = vpack.i.b16 %v1306_v56, %v1306_v56  ;;  %v2747_v18 = vrot.slane %v1360_v16, %v2420_v31  ;;  %v2750_v42 = vrot.slane %v1211_v59, %v2417_v27 }
 0x1a0   :  { %v1442_v12 = vshrl.u32 %v1919_v39, 16  ;;  %v1925_v8 = vcombine.high %v1499_v60, %v1499_v60  ;;  %v1924_v44 = vcombine.low %v1499_v60, %v1499_v60  ;;  %v2756_v51 = vrot.slane %v1291_v11, %v2477_v52 }
 0x1a1   :  { %2114 = vrot.lane.b32.xlu0 %v2093_v15, %s2288_s10  ;;  %v2759_v27 = vrot.slane %v1299_v1, %v2477_v52  ;;  %v2762_v55 = vrot.slane %v1307_v2, %v2477_v52 }
 0x1a2   :  { %2119 = vrot.lane.b32.xlu1 %v2088_v5, %s2289_s11 }
 0x1a5   :  { %2124 = vrot.lane.b32.xlu0 %v2093_v15, %s2289_s11  ;;  %s2258_s11 = scalar_lea.vmem %s1798_s28, 512 }
 0x1a6   :  { %2129 = vrot.lane.b32.xlu1 %v2088_v5, %s2290_s12  ;;  %p2259_p8 = scmp.ne.s32.totalorder %s1798_s28, %s2258_s11  ;;  %p2264_p10 = scmp.lt.s32.totalorder %s2258_s11, %s2258_s11 }
 0x1a8   :  { %p2265_p11 = por %p2264_p10, %p2263_p9 }
 0x1a9   :  { %2134 = vrot.lane.b32.xlu0 %v2093_v15, %s2290_s12 }
 0x1aa   :  { %2139 = vrot.lane.b32.xlu1 %v2088_v5, %s2291_s13  ;;  %p2266_p12 = pnand %p2265_p11, %p2259_p8 }
 0x1ad   :  { %2144 = vrot.lane.b32.xlu0 %v2093_v15, %s2291_s13 }
 0x1ae   :  { %2149 = vrot.lane.b32.xlu1 %v2088_v5, %s2292_s14 }
 0x1b1   :  { %2154 = vrot.lane.b32.xlu0 %v2093_v15, %s2292_s14 }
 0x1b2   :  { %2159 = vrot.lane.b32.xlu1 %v2088_v5, %s2293_s15  ;;  %v1058_v5 = vshrl.u32 %v1889_v58, 16  ;;  %v1915_v58 = vcombine.high %v1348_v35, %v1348_v35 }
 0x1b4   :  { %v1059_v32 = vpack.i.b16 %v1058_v5, %v1058_v5  ;;  %v1367_v5 = vpack.i.b16 %v1913_v48, %v1913_v48 }
 0x1b5   :  { %2164 = vrot.lane.b32.xlu0 %v2093_v15, %s2293_s15  ;;  %v1422_v15 = vld [vmem:[#allocation4 + $0x8] sm:$0x88] }
 0x1b6   :  { %1766 = vperm.xlu1 %2087, %v1763_v20   ;;  %v1906_v20 = vcombine.low %v1269_v10, %v1269_v10  ;;  %v1920_v33 = vcombine.low %v1422_v15, %v1422_v15  ;;  %v1921_v63 = vcombine.high %v1422_v15, %v1422_v15  ;;  %v2741_v9 = vrot.slane %v1059_v32, %v2414_v26 }
 0x1b7   :  { %v1434_v10 = vshrl.u32 %v1918_v47, 16  ;;  %v1519_v47 = vpack.i.b16 %v1925_v8, %v1925_v8 }
 0x1b8   :  { %v1282_v34 = vshrl.u32 %v1906_v20, 16  ;;  %v1450_v17 = vshrl.u32 %v1920_v33, 16  ;;  %v1458_v14 = vshrl.u32 %v1921_v63, 16  ;;  %v1381_v20 = vpack.i.b16 %v1915_v58, %v1915_v58 }
 0x1b9   :  { %1776 = vperm.xlu0 %2086, %v1773_v13   ;;  %v2721_v13 = vrot.slane %v981_v24, %v2414_v26  ;;  %v1500_v24 = vld [vmem:[#allocation4 + $0x18] sm:$0x11]  ;;  %v1435_v62 = vpack.i.b16 %v1434_v10, %v1434_v10  ;;  %v1443_v33 = vpack.i.b16 %v1442_v12, %v1442_v12  ;;  %v2789_v2 = vrot.slane %v1519_v47, %v2414_v26 }
 0x1ba   :  { %v1283_v19 = vpack.i.b16 %v1282_v34, %v1282_v34  ;;  %v1451_v29 = vpack.i.b16 %v1450_v17, %v1450_v17  ;;  %v1927_v15 = vcombine.high %v1500_v24, %v1500_v24  ;;  %v1926_v54 = vcombine.low %v1500_v24, %v1500_v24 }
 0x1bb   :  { %v1459_v32 = vpack.i.b16 %v1458_v14, %v1458_v14  ;;  %v2768_v34 = vrot.slane %v1367_v5, %v2420_v31  ;;  %v2773_v16 = vrot.slane %v1381_v20, %v2420_v31  ;;  %v2779_v24 = vrot.slane %v1443_v33, %v2420_v31 }
 0x1bc   :  { %v2753_v35 = vrot.slane %v1283_v19, %v2477_v52  ;;  %v2765_v7 = vrot.slane %v1451_v29, %v2420_v31  ;;  %v1533_v49 = vpack.i.b16 %v1927_v15, %v1927_v15  ;;  %v1512_v52 = vpack.i.b16 %v1924_v44, %v1924_v44 }
 0x1bd   :  { %v1526_v59 = vpack.i.b16 %v1926_v54, %v1926_v54  ;;  %v2776_v19 = vrot.slane %v1435_v62, %v2420_v31  ;;  %v2782_v10 = vrot.slane %v1459_v32, %v2420_v31 }
 0x1be   :  { %v2792_v12 = vrot.slane %v1533_v49, %v2414_v26  ;;  %v2799_v8 = vrot.slane %v1512_v52, %v2414_v26 }
 0x1bf   :  { %v2802_v15 = vrot.slane %v1526_v59, %v2414_v26 }
 0x208   :  { %v2090_v25 = vpop.permute.xlu1 %2089 }
 0x209   :  { %v2092_v45 = vunpack.i.h.bf16 %v2090_v25  ;;  %v2091_v43 = vunpack.i.l.bf16 %v2090_v25 }
 0x20b   :  { %v2095_v57 = vpop.permute.xlu0 %2094  ;;  %v941_v56 = vsel %vm64_vm0, %v2091_v43, %v2092_v45 }
 0x20c   :  { %v2097_v39 = vunpack.i.h.bf16 %v2095_v57  ;;  %v2096_v63 = vunpack.i.l.bf16 %v2095_v57  ;;  %v944_v17 = vpack.c.bf16 %v941_v56, %v941_v56  ;;  %v2100_v48 = vpop.permute.xlu1 %2099 }
 0x20d   :  { %v2102_v58 = vunpack.i.h.bf16 %v2100_v48  ;;  %v2101_v60 = vunpack.i.l.bf16 %v2100_v48 }
 0x20e   :  { %v939_v11 = vsel %vm64_vm0, %v2096_v63, %v2097_v39  ;;  %v940_v1 = vsel %vm64_vm0, %v2092_v45, %v2096_v63  ;;  %v942_v14 = vsel %vm64_vm0, %v2097_v39, %v2091_v43  ;;  %v988_v62 = vmul.bf16 %v2710_v0, %v944_v17 }
 0x20f   :  { %v2105_v29 = vpop.permute.xlu0 %2104  ;;  %v1015_v5 = vsel %vm139_vm1, %v2101_v60, %v2102_v58  ;;  %v946_v45 = vpack.c.bf16 %v939_v11, %v939_v11  ;;  %v945_v33 = vpack.c.bf16 %v940_v1, %v940_v1  ;;  %v943_v56 = vpack.c.bf16 %v942_v14, %v942_v14 }
 0x210   :  { %v2107_v20 = vunpack.i.h.bf16 %v2105_v29  ;;  %v2106_v44 = vunpack.i.l.bf16 %v2105_v29  ;;  %v1018_v54 = vpack.c.bf16 %v1015_v5, %v1015_v5  ;;  %v2110_v25 = vpop.permute.xlu1 %2109 }
 0x211   :  { %v2112_v32 = vunpack.i.h.bf16 %v2110_v25  ;;  %v2111_v43 = vunpack.i.l.bf16 %v2110_v25 }
 0x212   :  { %v1013_v47 = vsel %vm139_vm1, %v2106_v44, %v2107_v20  ;;  %v1014_v49 = vsel %vm139_vm1, %v2102_v58, %v2106_v44  ;;  %v1016_v26 = vsel %vm139_vm1, %v2107_v20, %v2101_v60  ;;  %v1066_v57 = vmul.bf16 %v2730_v38, %v1018_v54 }
 0x213   :  { %v1020_v52 = vpack.c.bf16 %v1013_v47, %v1013_v47  ;;  %v1019_v59 = vpack.c.bf16 %v1014_v49, %v1014_v49  ;;  %v1017_v39 = vpack.c.bf16 %v1016_v26, %v1016_v26  ;;  %v2115_v0 = vpop.permute.xlu0 %2114  ;;  %v1093_v48 = vsel %vm218_vm2, %v2111_v43, %v2112_v32 }
 0x214   :  { %v2117_v63 = vunpack.i.h.bf16 %v2115_v0  ;;  %v2116_v17 = vunpack.i.l.bf16 %v2115_v0  ;;  %v2120_v11 = vpop.permute.xlu1 %2119  ;;  %v1977_v1 = vcombine.low %v988_v62, %v1066_v57  ;;  %v989_v38 = vmul.bf16 %v2701_v53, %v945_v33 }
 0x215   :  { %v1067_v29 = vmul.bf16 %v2707_v46, %v1019_v59  ;;  %v1065_v58 = vmul.bf16 %v2704_v40, %v1017_v39  ;;  %v2122_v5 = vunpack.i.h.bf16 %v2120_v11  ;;  %v2121_v60 = vunpack.i.l.bf16 %v2120_v11 }
 0x216   :  { %v1091_v14 = vsel %vm218_vm2, %v2116_v17, %v2117_v63  ;;  %v1092_v20 = vsel %vm218_vm2, %v2112_v32, %v2116_v17  ;;  %v1094_v44 = vsel %vm218_vm2, %v2117_v63, %v2111_v43  ;;  %1681 = vmatprep.subr.bf16.mxu0 %v1977_v1  ;;  %v987_v54 = vmul.bf16 %v2698_v50, %v943_v56 }
 0x217   :  { %v1097_v25 = vpack.c.bf16 %v1092_v20, %v1092_v20  ;;  %v1096_v46 = vpack.c.bf16 %v1093_v48, %v1093_v48  ;;  %v2125_v62 = vpop.permute.xlu0 %2124  ;;  %v990_v40 = vmul.bf16 %v2721_v13, %v946_v45  ;;  %v1167_v53 = vsel %vm293_vm3, %v2121_v60, %v2122_v5 }
 0x218   :  { %v2127_v47 = vunpack.i.h.bf16 %v2125_v62  ;;  %v2126_v49 = vunpack.i.l.bf16 %v2125_v62  ;;  %v1068_v33 = vmul.bf16 %v2741_v9, %v1020_v52  ;;  %v2130_v26 = vpop.permute.xlu1 %2129  ;;  %v1098_v32 = vpack.c.bf16 %v1091_v14, %v1091_v14 }
 0x219   :  { %v1095_v57 = vpack.c.bf16 %v1094_v44, %v1094_v44  ;;  %v1976_v59 = vcombine.low %v987_v54, %v1065_v58  ;;  %v1978_v43 = vcombine.low %v989_v38, %v1067_v29  ;;  %v1170_v63 = vpack.c.bf16 %v1167_v53, %v1167_v53 }
 0x21a   :  { %v1165_v50 = vsel %vm293_vm3, %v2126_v49, %v2127_v47  ;;  %v1166_v56 = vsel %vm293_vm3, %v2122_v5, %v2126_v49  ;;  %v1168_v13 = vsel %vm293_vm3, %v2127_v47, %v2121_v60  ;;  %v1979_v45 = vcombine.low %v990_v40, %v1068_v33 }
 0x21b   :  { %v1171_v39 = vpack.c.bf16 %v1166_v56, %v1166_v56  ;;  %v1169_v0 = vpack.c.bf16 %v1168_v13, %v1168_v13  ;;  %1682 = vmatpush1.bf16.msra.mxu0 %v1976_v59  ;;  %v2135_v9 = vpop.permute.xlu0 %2134  ;;  %v2132_v52 = vunpack.i.h.bf16 %v2130_v26  ;;  %v1141_v17 = vmul.bf16 %v2716_v36, %v1097_v25 }
 0x21c   :  { %1722 = vmatprep.subr.bf16.mxu1 %v1979_v45  ;;  %v2137_v48 = vunpack.i.h.bf16 %v2135_v9  ;;  %v2136_v11 = vunpack.i.l.bf16 %v2135_v9  ;;  %v2131_v1 = vunpack.i.l.bf16 %v2130_v26  ;;  %v2140_v29 = vpop.permute.xlu1 %2139  ;;  %v1172_v58 = vpack.c.bf16 %v1165_v50, %v1165_v50 }
 0x21d   :  { %v1217_v5 = vmul.bf16 %v2724_v30, %v1169_v0  ;;  %1723 = vmatpush1.bf16.msra.mxu1 %v1978_v43  ;;  %v2142_v38 = vunpack.i.h.bf16 %v2140_v29  ;;  %v2141_v60 = vunpack.i.l.bf16 %v2140_v29  ;;  %v1139_v14 = vmul.bf16 %v2713_v6, %v1095_v57 }
 0x21e   :  { %v1261_v20 = vsel %vm390_vm4, %v2136_v11, %v2137_v48  ;;  %v1262_v44 = vsel %vm390_vm4, %v2132_v52, %v2136_v11  ;;  %v1263_v36 = vsel %vm390_vm4, %v2131_v1, %v2132_v52  ;;  %v1219_v54 = vmul.bf16 %v2727_v4, %v1171_v39 }
 0x21f   :  { %v1267_v25 = vpack.c.bf16 %v1261_v20, %v1261_v20  ;;  %v1264_v30 = vsel %vm390_vm4, %v2137_v48, %v2131_v1  ;;  %v2145_v62 = vpop.permute.xlu0 %2144  ;;  %v1140_v40 = vmul.bf16 %v2735_v37, %v1096_v46  ;;  %v1341_v49 = vsel %vm469_vm5, %v2141_v60, %v2142_v38 }
 0x220   :  { %v2147_v47 = vunpack.i.h.bf16 %v2145_v62  ;;  %v2146_v6 = vunpack.i.l.bf16 %v2145_v62  ;;  %v1218_v53 = vmul.bf16 %v2744_v61, %v1170_v63  ;;  %v2150_v33 = vpop.permute.xlu1 %2149  ;;  %v1266_v26 = vpack.c.bf16 %v1262_v44, %v1262_v44 }
 0x221   :  { %v1265_v57 = vpack.c.bf16 %v1263_v36, %v1263_v36  ;;  %v1220_v59 = vmul.bf16 %v2750_v42, %v1172_v58  ;;  %v1980_v4 = vcombine.low %v1139_v14, %v1217_v5  ;;  %v1142_v46 = vmul.bf16 %v2738_v3, %v1098_v32 }
 0x222   :  { %v1340_v43 = vsel %vm469_vm5, %v2142_v38, %v2146_v6  ;;  %v1342_v50 = vsel %vm469_vm5, %v2147_v47, %v2141_v60  ;;  %v1981_v37 = vcombine.low %v1140_v40, %v1218_v53  ;;  %v1268_v56 = vpack.c.bf16 %v1264_v30, %v1264_v30 }
 0x223   :  { %v2858_v13 = vsel %vm469_vm5, %v2146_v6, %v2147_v47  ;;  %v1344_v61 = vpack.c.bf16 %v1340_v43, %v1340_v43  ;;  %v1343_v45 = vpack.c.bf16 %v1341_v49, %v1341_v49  ;;  %v2155_v39 = vpop.permute.xlu0 %2154  ;;  %v1983_v42 = vcombine.low %v1142_v46, %v1220_v59 }
 0x224   :  { %1683 = vmatprep.subr.bf16.mxu0 %v1981_v37  ;;  %v1982_v0 = vcombine.low %v1141_v17, %v1219_v54  ;;  %v2157_v63 = vunpack.i.h.bf16 %v2155_v39  ;;  %v2156_v9 = vunpack.i.l.bf16 %v2155_v39  ;;  %v2160_v52 = vpop.permute.xlu1 %2159  ;;  %v1346_v48 = vpack.c.bf16 %v1342_v50, %v1342_v50 }
 0x225   :  { %1684 = vmatpush1.bf16.msra.mxu0 %v1980_v4  ;;  %v2152_v11 = vunpack.i.h.bf16 %v2150_v33  ;;  %v2151_v1 = vunpack.i.l.bf16 %v2150_v33  ;;  %v2162_v29 = vunpack.i.h.bf16 %v2160_v52  ;;  %1724 = vmatprep.subr.bf16.mxu1 %v1983_v42  ;;  %v2161_v32 = vunpack.i.l.bf16 %v2160_v52 }
 0x226   :  { %v1413_v3 = vsel %vm544_vm6, %v2156_v9, %v2157_v63  ;;  %v1313_v58 = vmul.bf16 %v2753_v35, %v1265_v57  ;;  %v1314_v5 = vmul.bf16 %v2756_v51, %v1266_v26  ;;  %v1387_v38 = vmul.bf16 %v2747_v18, %v1343_v45  ;;  %1725 = vmatpush1.bf16.msra.mxu1 %v1982_v0 }
 0x227   :  { %v1414_v17 = vsel %vm544_vm6, %v2152_v11, %v2156_v9  ;;  %v1415_v60 = vsel %vm544_vm6, %v2151_v1, %v2152_v11  ;;  %v1416_v14 = vsel %vm544_vm6, %v2157_v63, %v2151_v1  ;;  %v2165_v20 = vpop.permute.xlu0 %2164  ;;  %v1419_v44 = vpack.c.bf16 %v1413_v3, %v1413_v3 }
 0x228   :  { %v1418_v36 = vpack.c.bf16 %v1414_v17, %v1414_v17  ;;  %v1417_v54 = vpack.c.bf16 %v1415_v60, %v1415_v60  ;;  %v2167_v30 = vunpack.i.h.bf16 %v2165_v20  ;;  %v1420_v35 = vpack.c.bf16 %v1416_v14, %v1416_v14  ;;  %v2233_v17 = vld [vmem:[%s2934_s0 + $0x8] sm:$0xff] }
 0x229   :  { %v2166_v62 = vunpack.i.l.bf16 %v2165_v20  ;;  %v1493_v18 = vsel %vm623_vm7, %v2161_v32, %v2162_v29  ;;  %v1910_v51 = vcombine.low %v1313_v58, %v1314_v5  ;;  %v1315_v49 = vmul.bf16 %v2759_v27, %v1267_v25 }
 0x22a   :  { %v1465_v40 = vmul.bf16 %v2776_v19, %v1417_v54  ;;  %v1494_v47 = vsel %vm623_vm7, %v2167_v30, %v2161_v32  ;;  %v1495_v6 = vpack.c.bf16 %v1493_v18, %v1493_v18  ;;  %v1316_v43 = vmul.bf16 %v2762_v55, %v1268_v56  ;;  %v2232_v32 = vld [vmem:[%s2934_s0] sm:$0xff]  ;;  %v2235_v18 = vld [vmem:[%s2934_s0 + $0x18] sm:$0xff] }
 0x22b   :  { %v1491_v53 = vsel %vm623_vm7, %v2166_v62, %v2167_v30  ;;  %v1492_v33 = vsel %vm623_vm7, %v2162_v29, %v2166_v62  ;;  %v1498_v26 = vpack.c.bf16 %v1494_v47, %v1494_v47  ;;  %v1939_v57 = vcombine.high %v2678_v23, %v1910_v51 }
 0x22c   :  { %v1497_v59 = vpack.c.bf16 %v1491_v53, %v1491_v53  ;;  %v1496_v4 = vpack.c.bf16 %v1492_v33, %v1492_v33  ;;  %v1984_v19 = vcombine.low %v2678_v23, %v1313_v58  ;;  %v1379_v27 = vrot.slane %v1374_v22, %v2420_v31 }
 0x22d   :  { %v1345_v25 = vpack.c.bf16 %v2858_v13, %v2858_v13  ;;  %1685 = vmatprep.subr.bf16.mxu0 %v1939_v57  ;;  %v1388_v21 = vmul.bf16 %v2768_v34, %v1344_v61  ;;  %v1466_v50 = vmul.bf16 %v2779_v24, %v1418_v36  ;;  %v1911_v37 = vcombine.low %v1315_v49, %v1316_v43 }
 0x22e   :  { %1686 = vmatpush1.bf16.msra.mxu0 %v1984_v19  ;;  %v1390_v46 = vmul.bf16 %v2773_v16, %v1346_v48  ;;  %v1468_v55 = vmul.bf16 %v2782_v10, %v1420_v35  ;;  %v1986_v23 = vcombine.low %v1387_v38, %v1465_v40  ;;  %v1467_v56 = vmul.bf16 %v2765_v7, %v1419_v44  ;;  %v2234_v35 = vld [vmem:[%s2934_s0 + $0x10] sm:$0xff] }
 0x22f   :  { %v1987_v45 = vcombine.low %v1388_v21, %v1466_v50  ;;  %v1540_v31 = vmul.bf16 %v2789_v2, %v1496_v4  ;;  %v1539_v41 = vmul.bf16 %v2799_v8, %v1495_v6  ;;  %v1941_v22 = vcombine.high %v2680_v28, %v1911_v37 }
 0x230   :  { %v1989_v13 = vcombine.low %v1390_v46, %v1468_v55  ;;  %v1542_v34 = vmul.bf16 %v2792_v12, %v1498_v26  ;;  %v1541_v24 = vmul.bf16 %v2802_v15, %v1497_v59  ;;  %v1389_v61 = vmul.bf16 %v1379_v27, %v1345_v25  ;;  %v1557_v12 = vld [vmem:[%s2940_s6] sm:$0xf] }
 0x231   :  { %v1985_v16 = vcombine.low %v2680_v28, %v1315_v49  ;;  %1687 = vmatprep.subr.bf16.mxu0 %v1987_v45  ;;  %v1991_v10 = vcombine.low %v1540_v31, %v1540_v31  ;;  %v1990_v39 = vcombine.low %v1539_v41, %v1539_v41  ;;  %1726 = vmatprep.subr.bf16.mxu1 %v1941_v22 }
 0x232   :  { %1688 = vmatpush1.bf16.msra.mxu0 %v1986_v23  ;;  %v1988_v7 = vcombine.low %v1389_v61, %v1467_v56  ;;  %v1993_v8 = vcombine.low %v1542_v34, %v1542_v34  ;;  %v1992_v42 = vcombine.low %v1541_v24, %v1541_v24 }
 0x233   :  { %1727 = vmatpush1.bf16.msra.mxu1 %v1985_v16  ;;  %1950 = vmatprep.subr.msk.bf16.mxu0 %vm803_vm8, %v1991_v10  ;;  %v1670_v2 = vsel %vm803_vm8, %v1990_v39, 0 }
 0x234   :  { %1728 = vmatprep.subr.bf16.mxu1 %v1989_v13  ;;  %v1676_v28 = vsel %vm803_vm8, %v1992_v42, 0 }
 0x235   :  { %v1767_v15 = vpop.permute.xlu1 %1766 }
 0x236   :  { %1690 = vmatpush1.bf16.msra.mxu0 %v1670_v2 }
 0x237   :  { %1729 = vmatpush1.bf16.msra.mxu1 %v1988_v7 }
 0x238   :  { %1952 = vmatprep.subr.msk.bf16.mxu1 %vm803_vm8, %v1993_v8  ;;  %v1777_v52 = vpop.permute.xlu0 %1776 }
 0x239   :  { %1951 = vmatmul.mubr.msk.bf16.vlgmr.msra.gmra.mrb[4].mxu0 %vm799_vm9, %v1557_v12 }
 0x23b   :  { %1731 = vmatpush1.bf16.msra.mxu1 %v1676_v28 }
 0x23e   :  { %1953 = vmatmul.mubr.msk.bf16.vlgmr.msra.gmra.mrb[4].mxu1 %vm799_vm9, %v1557_v12 }
 0x30c   :  { %v1715_v0 = vpop.f32.mrb[4].mxu0 }
 0x30d   :  { %v1769_v63 = vmul.f32 %v1767_v15, %v1715_v0  ;;  %v1717_v9 = vpop.f32.mrb[5].mxu0 }
 0x30e   :  { %v1770_v48 = vmul.f32 %v1767_v15, %v1717_v9  ;;  %v1719_v11 = vpop.f32.mrb[6].mxu0 }
 0x30f   :  { %v1779_v1 = vadd.f32 %v1777_v52, %v1769_v63  ;;  %v1720_v29 = vpop.f32.mrb[7].mxu0 }
 0x310   :  { %v1780_v3 = vadd.f32 %v1777_v52, %v1770_v48 }
 0x311   :  { %v1783_v58 = vadd.f32 %v2232_v32, %v1779_v1  ;;  %v1756_v5 = vpop.f32.mrb[4].mxu1 }
 0x312   :  { %v1771_v38 = vmul.f32 %v1767_v15, %v1756_v5  ;;  %v1784_v60 = vadd.f32 %v2233_v17, %v1780_v3  ;;  %v1758_v14 = vpop.f32.mrb[5].mxu1 }
 0x313   :  { %1787 = vst [vmem:[#allocation7] sm:$0xff] %v1783_v58  ;;  %v1772_v20 = vmul.f32 %v1767_v15, %v1758_v14  ;;  %v1760_v44 = vpop.f32.mrb[6].mxu1 }
 0x314   :  { %v1781_v36 = vadd.f32 %v1777_v52, %v1771_v38  ;;  %1788 = vst [vmem:[#allocation7 + $0x8] sm:$0xff] %v1784_v60  ;;  %v1761_v54 = vpop.f32.mrb[7].mxu1 }
 0x315   :  { %v1782_v30 = vadd.f32 %v1777_v52, %v1772_v20 }
 0x316   :  { %v1785_v62 = vadd.f32 %v2234_v35, %v1781_v36 }
 0x317   :  { %v1786_v51 = vadd.f32 %v2235_v18, %v1782_v30 }
 0x318   :  { %1789 = vst [vmem:[#allocation7 + $0x10] sm:$0xff] %v1785_v62 }
 0x319   :  { %1790 = vst [vmem:[#allocation7 + $0x18] sm:$0xff] %v1786_v51 }
 0x31a   :  { %2269 = shalt.err (!%p2266_p12)
}
 0x31b   :  { %s2270_s14 = scalar_lea.hbm %s2943_s9, 512 }
 0x31c   :  { %p2271_p13 = scmp.ne.s32.totalorder %s2943_s9, %s2270_s14  ;;  %p2274_p0 = scmp.lt.u32.totalorder %s2270_s14, %s2943_s9 }
 0x31e   :  { %p2276_p1 = pnand %p2274_p0, %p2271_p13 }
 0x320   :  { %2279 = shalt.err (!%p2276_p1)
}
 0x321   :  { %1800 = dma.vmem_to_hbm [thread:$0]  %s1798_s28, 512, %s2943_s9, [#allocation6]  }
 0x322   :  { %2282 = dma.done.wait [#allocation6], 512  }
 0x323   :  { %2283 = vsyncadd [#allocation6], 4294966784 }
 0x324   :  { %1804 = vsyncpa [#allocation5], 1 }
 0x325   :  { %1805 = vsyncpa [#allocation6], 1 }

</bundles_post_ra>
